<compile_context>
chip_gen: v7x
topology: tpu7x:2x2x1
jax: 0.10.0
libtpu: 0.0.40
codegen_flags: <defaults>
</compile_context>

<pallas_src>
import math
import functools

import numpy as np
import jax
import jax.numpy as jnp
from jax import lax
from jax.experimental import pallas as pl
from jax.experimental.pallas import tpu as pltpu


# ---------------------------------------------------------------------------
# Fused Pallas kernel: cost + attention fusion over views + regnet epilogue.
# grid = (B, HW_tiles); all views are resident, reduction runs in registers.
# ---------------------------------------------------------------------------
def _fused_kernel(warped_ref, ref_ref, dh_ref, regwb_ref,
                  corf_ref, attn_ref, depth_ref,
                  *, inv_attn_temp, inv_sqrt_c, num_ch, num_d, nsrc,
                  lane_chunk):
    t_hw = ref_ref.shape[-1]
    chunk = min(lane_chunk, t_hw)
    n_full = t_hw // chunk
    rem = t_hw - n_full * chunk

    # regnet 1x1x1-conv parameters (C weights + bias) read once from SMEM.
    reg_w = [regwb_ref[c] for c in range(num_ch)]
    reg_b = regwb_ref[num_ch]

    def process(off, csize):
        ref = ref_ref[0, :, pl.ds(off, csize)]                   # (C, n) f32

        cws = jnp.full((num_d, csize), 1e-8, jnp.float32)        # (D, n)
        corf = jnp.zeros((num_ch, num_d, csize), jnp.float32)    # (C, D, n)
        for v in range(nsrc):
            # cast bf16->f32 first, then split (C*D, n) -> (C, D, n): when D
            # matches the 8-row f32 sublane tile this reshape is a no-op.
            wv = warped_ref[v, 0, :, pl.ds(off, csize)].astype(jnp.float32)
            wv = wv.reshape(num_ch, num_d, csize)
            diff = ref[:, None, :] - wv
            cf = diff * diff                                     # (C, D, n)
            s = jnp.sum(cf, axis=0) * inv_attn_temp              # (D, n)
            m = jnp.max(s, axis=0, keepdims=True)
            e = jnp.exp(s - m)
            w = (e / jnp.sum(e, axis=0, keepdims=True)) * inv_sqrt_c
            cws = cws + w
            corf = corf + w[None, :, :] * cf

        # normalize (exact divide: feeds later MVS stages) + regnet reduction
        corf = corf * (1.0 / cws)[None, :, :]                    # (C, D, n)
        logits = reg_b + reg_w[0] * corf[0]
        for c in range(1, num_ch):
            logits = logits + reg_w[c] * corf[c]                 # (D, n)

        # single bf16 store of the normalized, (C*D)-collapsed cost chunk
        corf_ref[0, :, pl.ds(off, csize)] = (
            corf.reshape(num_ch * num_d, csize).astype(corf_ref.dtype))

        mlog = jnp.max(logits, axis=0, keepdims=True)            # (1, n)
        elog = jnp.exp(logits - mlog)
        attn = elog / jnp.sum(elog, axis=0, keepdims=True)
        attn_ref[0, :, pl.ds(off, csize)] = attn

        # argmax over D (first-occurrence tie break) + depth gather
        iota_d = lax.broadcasted_iota(jnp.int32, logits.shape, 0)
        is_max = logits == mlog
        idx = jnp.min(jnp.where(is_max, iota_d, num_d), axis=0, keepdims=True)
        onehot = iota_d == idx                                   # (D, n)
        dh = dh_ref[0, :, pl.ds(off, csize)]
        depth_ref[0, :, pl.ds(off, csize)] = jnp.sum(
            jnp.where(onehot, dh, 0.0), axis=0, keepdims=True)

    @pl.loop(0, n_full)
    def _(ci):
        process(pl.multiple_of(ci * chunk, chunk), chunk)

    if rem > 0:                      # trailing lanes when t_hw % chunk != 0
        process(n_full * chunk, rem)


# ---------------------------------------------------------------------------
# Generation-aware tiling.
# ---------------------------------------------------------------------------
def _vmem_capacity_bytes(default=64 << 20):
    try:
        return int(pltpu.get_tpu_info().vmem_capacity_bytes)
    except Exception:
        return default               # conservative (v7x-sized) fallback


def _choose_hw_tile(hw, per_lane_bytes, budget_bytes, max_tile):
    """Largest lane tile (multiple of 128, dividing HW) whose double-buffered
    pipeline footprint stays within budget_bytes."""
    cap = max(128, min(max_tile, budget_bytes // (2 * per_lane_bytes)))
    cap = (cap // 128) * 128
    if hw <= cap or hw % 128 != 0:
        return hw                    # full extent is always a legal block
    for t in range(cap, 127, -128):
        if hw % t == 0:
            return t
    return 128


def fused_cost_attn_depth(warped_all, ref_flat, dh_flat, reg_wb, attn_temp):
    nsrc, B, CD, HW = warped_all.shape
    C = ref_flat.shape[1]
    D = dh_flat.shape[1]
    assert CD == C * D

    # bytes/lane of all pipelined blocks (warped, ref, dh, corf, attn, depth)
    per_lane = nsrc * CD * 2 + C * 4 + D * 4 + CD * 2 + D * 4 + 4

    vmem_cap = _vmem_capacity_bytes()
    if vmem_cap >= (100 << 20):      # 128 MiB parts (v5e / v6e): big tiles
        budget, max_tile = 40 << 20, 8192
    else:                            # 64 MiB parts (v7x) or unknown
        budget, max_tile = 16 << 20, 4096

    t_hw = _choose_hw_tile(HW, per_lane, budget, max_tile)
    # megacore: guarantee >= 2 parallel grid steps so no TensorCore idles
    if B * (HW // t_hw) < 2 and HW % 128 == 0 and HW >= 256:
        for t in range((min(t_hw, HW // 2) // 128) * 128, 127, -128):
            if HW % t == 0:
                t_hw = t
                break
    n_t = HW // t_hw

    resident = 2 * per_lane * t_hw   # double-buffered steady-state footprint
    vmem_limit = int(min(vmem_cap - (8 << 20),
                         max(32 << 20, resident + (16 << 20))))

    kernel = functools.partial(
        _fused_kernel,
        inv_attn_temp=1.0 / float(attn_temp),
        inv_sqrt_c=1.0 / math.sqrt(C),
        num_ch=C, num_d=D, nsrc=nsrc,
        lane_chunk=128)              # chunk stays in vregs (~30 live vregs)

    cost = pl.CostEstimate(
        flops=int(B * HW * (nsrc * (5 * C * D + 8 * D) + 4 * C * D + 14 * D)),
        transcendentals=int(B * HW * D * (nsrc + 1)),
        bytes_accessed=int(nsrc * B * CD * HW * 2          # warped (bf16)
                           + B * C * HW * 4 + B * D * HW * 4
                           + B * CD * HW * 2               # fused cost (bf16)
                           + B * D * HW * 4 + B * HW * 4 + (C + 1) * 4))

    out_shape = (jax.ShapeDtypeStruct((B, CD, HW), jnp.bfloat16),
                 jax.ShapeDtypeStruct((B, D, HW), jnp.float32),
                 jax.ShapeDtypeStruct((B, 1, HW), jnp.float32))

    corf, attn, depth = pl.pallas_call(
        kernel,
        out_shape=out_shape,
        grid=(B, n_t),
        in_specs=[
            pl.BlockSpec((nsrc, 1, CD, t_hw), lambda b, t: (0, b, 0, t)),
            pl.BlockSpec((1, C, t_hw), lambda b, t: (b, 0, t)),
            pl.BlockSpec((1, D, t_hw), lambda b, t: (b, 0, t)),
            pl.BlockSpec(memory_space=pltpu.MemorySpace.SMEM),  # reg_wb (C+1,)
        ],
        out_specs=(
            pl.BlockSpec((1, CD, t_hw), lambda b, t: (b, 0, t)),
            pl.BlockSpec((1, D, t_hw), lambda b, t: (b, 0, t)),
            pl.BlockSpec((1, 1, t_hw), lambda b, t: (b, 0, t)),
        ),
        compiler_params=pltpu.CompilerParams(
            dimension_semantics=("parallel", "parallel"),
            vmem_limit_bytes=vmem_limit),
        cost_estimate=cost,
    )(warped_all, ref_flat, dh_flat, reg_wb)
    return corf, attn, depth


# ---------------------------------------------------------------------------
# JAX glue: homography warping (grid_sample bilinear, zeros padding,
# align_corners=True) — the normalize/de-normalize of grid_sample cancels.
# ---------------------------------------------------------------------------
def homo_warping_jax(src_fea, src_proj, ref_proj, depth_values):
    B, C, Hs, Ws = src_fea.shape
    _, D, Hr, Wr = depth_values.shape
    HWr, HWs = Hr * Wr, Hs * Ws

    proj = jnp.matmul(src_proj, jnp.linalg.inv(ref_proj))   # (B, 4, 4)
    rot = proj[:, :3, :3]
    trans = proj[:, :3, 3:4]

    yy, xx = jnp.meshgrid(jnp.arange(Hr, dtype=jnp.float32),
                          jnp.arange(Wr, dtype=jnp.float32), indexing="ij")
    xyz = jnp.stack([xx.reshape(-1), yy.reshape(-1),
                     jnp.ones((HWr,), jnp.float32)], axis=0)            # (3, HWr)
    rot_xyz = jnp.einsum("bij,jp->bip", rot, xyz)                       # (B,3,HWr)
    rot_depth_xyz = rot_xyz[:, :, None, :] * depth_values.reshape(B, 1, D, HWr)
    proj_xyz = rot_depth_xyz + trans[:, :, :, None]                     # (B,3,D,HWr)
    z = proj_xyz[:, 2]
    z = jnp.where(z == 0.0, 1e-9, z)
    px = proj_xyz[:, 0] / z                                             # (B,D,HWr)
    py = proj_xyz[:, 1] / z

    fea = src_fea.reshape(B, C, HWs)

    x0 = jnp.floor(px); y0 = jnp.floor(py)
    x1 = x0 + 1.0;      y1 = y0 + 1.0
    wx1 = px - x0; wx0 = 1.0 - wx1
    wy1 = py - y0; wy0 = 1.0 - wy1

    def gather(xi, yi):
        valid = (xi >= 0) & (xi <= Ws - 1) & (yi >= 0) & (yi <= Hs - 1)
        xi_c = jnp.clip(xi, 0, Ws - 1).astype(jnp.int32)
        yi_c = jnp.clip(yi, 0, Hs - 1).astype(jnp.int32)
        flat = yi_c * Ws + xi_c                                         # (B,D,HWr)
        vals = jnp.take_along_axis(fea[:, :, None, :],                  # (B,C,1,HWs)
                                   flat[:, None, :, :], axis=3)         # (B,C,D,HWr)
        return vals * valid[:, None, :, :].astype(vals.dtype)

    warped = ((wy0 * wx0)[:, None] * gather(x0, y0)
              + (wy0 * wx1)[:, None] * gather(x1, y0)
              + (wy1 * wx0)[:, None] * gather(x0, y1)
              + (wy1 * wx1)[:, None] * gather(x1, y1))
    return warped                                                       # (B,C,D,HWr)


def _combine_proj(p):
    new = p[:, 0]
    upd = jnp.matmul(p[:, 1, :3, :3], p[:, 0, :3, :4])
    return new.at[:, :3, :4].set(upd)


# ---------------------------------------------------------------------------
# stagenet forward (training mode, inverse_depth=False, attn_fuse_d=True,
# group_cor=False, stage_idx=0).  regnet is a deterministic 1x1x1-conv
# channel reduction executed inside the fused Pallas kernel's epilogue;
# cross_view_net is unused at stage_idx=0.
# ---------------------------------------------------------------------------
def stagenet_forward(ref_feature, src_features, proj_matrices, depth_hypo,
                     reg_w, reg_b, stage_idx=0, attn_temp=2.0):
    B, D, H, W = depth_hypo.shape
    C = ref_feature.shape[1]
    HW = H * W
    nsrc = proj_matrices.shape[1] - 1

    ref_proj_new = _combine_proj(proj_matrices[:, 0])
    warped = []
    for i in range(1, proj_matrices.shape[1]):
        src_proj_new = _combine_proj(proj_matrices[:, i])
        # bf16 narrows the largest HBM read (the kernel is HBM-bound)
        warped.append(
            homo_warping_jax(src_features[i - 1], src_proj_new, ref_proj_new,
                             depth_hypo).astype(jnp.bfloat16))
    # collapse (C, D) so the bf16 stack packs (16,128) sublanes densely
    warped_all = jnp.stack(warped, axis=0).reshape(nsrc, B, C * D, HW)

    ref_flat = ref_feature.reshape(B, C, HW)
    dh_flat = depth_hypo.reshape(B, D, HW)
    reg_wb = jnp.concatenate([jnp.asarray(reg_w, jnp.float32).reshape(-1),
                              jnp.asarray(reg_b, jnp.float32).reshape(1)])

    corf, attn, depth = fused_cost_attn_depth(
        warped_all, ref_flat, dh_flat, reg_wb, attn_temp)

    ret = {
        "depth": depth.reshape(B, H, W),
        # nn.Module default is training mode -> scalar 0.0 confidence
        # TODO(synk): eval-mode bilinear F.interpolate of confidence omitted.
        "photometric_confidence": jnp.float32(0.0),
        "hypo_depth": depth_hypo,
        "attn_weight": attn.reshape(B, D, H, W),
        # bf16 output halves the dominant HBM writeback of the fused kernel
        "coarse_cost": corf.reshape(B, C, D, H, W),
    }
    # TODO(synk): cross_view_net path (stage_idx > 0), group_cor and
    # inverse_depth branches are not exercised at stage_idx=0.
    return ret


if __name__ == "__main__":
    key = jax.random.PRNGKey(0)
    B, C, D, H, W = 2, 8, 8, 16, 16
    nsrc = 2
    nviews = nsrc + 1
    HW = H * W

    kref, ksrc, kd = jax.random.split(key, 3)
    ref_feature = jax.random.normal(kref, (B, C, H, W), jnp.float32)
    src_features = [jax.random.normal(jax.random.fold_in(ksrc, i),
                                      (B, C, H, W), jnp.float32)
                    for i in range(nsrc)]

    # projection matrices: per view [extrinsic(4x4), intrinsic(4x4)]
    mats = []
    for v in range(nviews):
        ang = 0.04 * v
        ca, sa = np.cos(ang), np.sin(ang)
        E = np.eye(4, dtype=np.float32)
        E[:3, :3] = np.array([[ca, -sa, 0.0], [sa, ca, 0.0], [0.0, 0.0, 1.0]],
                             dtype=np.float32)
        E[:3, 3] = np.array([0.10 * v, -0.05 * v, 0.02 * v], dtype=np.float32)
        K = np.eye(4, dtype=np.float32)
        K[0, 0] = K[1, 1] = float(W)
        K[0, 2] = (W - 1) / 2.0
        K[1, 2] = (H - 1) / 2.0
        mats.append(np.stack([E, K], axis=0))
    proj_np = np.stack(mats, axis=0)[None]               # (1, nviews, 2, 4, 4)
    proj_matrices = jnp.asarray(
        np.broadcast_to(proj_np, (B, nviews, 2, 4, 4)).copy())

    base = jnp.linspace(2.0, 6.0, D, dtype=jnp.float32)
    depth_hypo = jnp.broadcast_to(base[None, :, None, None], (B, D, H, W))
    depth_hypo = depth_hypo + 0.01 * jax.random.normal(kd, (B, D, H, W),
                                                       jnp.float32)

    # deterministic regnet parameters (1x1x1 conv: C -> 1)
    reg_w = ((jnp.arange(C, dtype=jnp.float32) - (C - 1) / 2.0) / C * 0.5)
    reg_b = 0.1
    attn_temp = 2.0

    fwd = jax.jit(stagenet_forward, static_argnames=("stage_idx", "attn_temp"))
    out = fwd(ref_feature, src_features, proj_matrices, depth_hypo, reg_w,
              reg_b, stage_idx=0, attn_temp=attn_temp)
    out = jax.block_until_ready(out)

    # ---- pure-JAX reference (same bf16-quantized warped features) ----------
    ref_proj_new = _combine_proj(proj_matrices[:, 0])
    warped_list = []
    for i in range(nsrc):
        sp_new = _combine_proj(proj_matrices[:, i + 1])
        warped_list.append(
            homo_warping_jax(src_features[i], sp_new, ref_proj_new, depth_hypo)
            .astype(jnp.bfloat16))
    warped_f32 = jnp.stack(warped_list, 0).astype(jnp.float32)
    ref_flat = ref_feature.reshape(B, C, HW)
    cws = 1e-8
    corf = 0.0
    for v in range(nsrc):
        cf = (ref_flat[:, :, None, :] - warped_f32[v]) ** 2
        wv = jax.nn.softmax(cf.sum(1) / attn_temp, axis=1) / math.sqrt(C)
        cws = cws + wv
        corf = corf + wv[:, None] * cf
    corf = corf / cws[:, None]
    logits = jnp.einsum("c,bcdp->bdp", reg_w, corf) + reg_b
    attn_ref = jax.nn.softmax(logits, axis=1)

    attn = out["attn_weight"].reshape(B, D, HW)
    assert out["attn_weight"].shape == (B, D, H, W)
    assert bool(jnp.all(jnp.isfinite(attn)))
    assert bool(jnp.allclose(jnp.sum(attn, axis=1), 1.0, atol=2e-2))
    assert bool(jnp.allclose(attn, attn_ref, atol=2e-2))

    cc = out["coarse_cost"].astype(jnp.float32).reshape(B, C, D, HW)
    assert out["coarse_cost"].shape == (B, C, D, H, W)
    assert bool(jnp.allclose(cc, corf, rtol=5e-2, atol=1e-3))

    depth = out["depth"]
    assert depth.shape == (B, H, W)
    assert bool(jnp.all(jnp.isfinite(depth)))
    # selected depth must be an exact member of the hypothesis set per pixel
    gap = jnp.min(jnp.abs(depth_hypo - depth[:, None, :, :]), axis=1)
    assert float(jnp.max(gap)) < 1e-5

    print("KERNEL_OK")
</pallas_src>

<mosaic_0001>
module attributes {stable_mosaic.version = 11 : i64} {
  func.func @_fused_kernel(%arg0: i32, %arg1: i32, %arg2: memref<2x1x64x256xbf16, #tpu.memory_space<vmem>>, %arg3: memref<1x8x256xf32, #tpu.memory_space<vmem>>, %arg4: memref<1x8x256xf32, #tpu.memory_space<vmem>>, %arg5: memref<9xf32, #tpu.memory_space<smem>>, %arg6: memref<1x64x256xbf16, #tpu.memory_space<vmem>>, %arg7: memref<1x8x256xf32, #tpu.memory_space<vmem>>, %arg8: memref<1x1x256xf32, #tpu.memory_space<vmem>>) attributes {dimension_semantics = [#tpu.dimension_semantics<parallel>, #tpu.dimension_semantics<parallel>], iteration_bounds = array<i64: 2, 1>, scalar_prefetch = 0 : i64, scratch_operands = 0 : i64, tpu.core_type = #tpu.core_type<tc>, window_params = [{transform_indices = @transform_0, window_bounds = array<i64: 2, 1, 64, 256>}, {transform_indices = @transform_1, window_bounds = array<i64: 1, 8, 256>}, {transform_indices = @transform_2, window_bounds = array<i64: 1, 8, 256>}, {transform_indices = @transform_3, window_bounds = array<i64: 9>}, {transform_indices = @transform_4, window_bounds = array<i64: 1, 64, 256>}, {transform_indices = @transform_5, window_bounds = array<i64: 1, 8, 256>}, {transform_indices = @transform_6, window_bounds = array<i64: 1, 1, 256>}]} {
    %c0 = arith.constant 0 : index
    %0 = memref.load %arg5[%c0] : memref<9xf32, #tpu.memory_space<smem>>
    %c1 = arith.constant 1 : index
    %1 = memref.load %arg5[%c1] : memref<9xf32, #tpu.memory_space<smem>>
    %c2 = arith.constant 2 : index
    %2 = memref.load %arg5[%c2] : memref<9xf32, #tpu.memory_space<smem>>
    %c3 = arith.constant 3 : index
    %3 = memref.load %arg5[%c3] : memref<9xf32, #tpu.memory_space<smem>>
    %c4 = arith.constant 4 : index
    %4 = memref.load %arg5[%c4] : memref<9xf32, #tpu.memory_space<smem>>
    %c5 = arith.constant 5 : index
    %5 = memref.load %arg5[%c5] : memref<9xf32, #tpu.memory_space<smem>>
    %c6 = arith.constant 6 : index
    %6 = memref.load %arg5[%c6] : memref<9xf32, #tpu.memory_space<smem>>
    %c7 = arith.constant 7 : index
    %7 = memref.load %arg5[%c7] : memref<9xf32, #tpu.memory_space<smem>>
    %c8 = arith.constant 8 : index
    %8 = memref.load %arg5[%c8] : memref<9xf32, #tpu.memory_space<smem>>
    %c0_i32 = arith.constant 0 : i32
    %c2_i32 = arith.constant 2 : i32
    %9 = arith.addi %c0_i32, %c2_i32 : i32
    %c1_i32 = arith.constant 1 : i32
    scf.for %arg9 = %c0_i32 to %9 step %c1_i32  : i32 {
      %c1_i32_1 = arith.constant 1 : i32
      %10 = arith.muli %arg9, %c1_i32_1 : i32
      %c0_i32_2 = arith.constant 0 : i32
      %11 = arith.addi %c0_i32_2, %10 : i32
      %c128_i32 = arith.constant 128 : i32
      %12 = arith.muli %11, %c128_i32 : i32
      %13 = tpu.assume_multiple %12, 128 : i32
      %c0_3 = arith.constant 0 : index
      %c0_4 = arith.constant 0 : index
      %14 = arith.index_cast %13 : i32 to index
      %15 = vector.load %arg3[%c0_3, %c0_4, %14] : memref<1x8x256xf32, #tpu.memory_space<vmem>>, vector<1x8x128xf32>
      %16 = vector.shape_cast %15 : vector<1x8x128xf32> to vector<8x128xf32>
      %cst = arith.constant 9.99999993E-9 : f32
      %17 = vector.broadcast %cst : f32 to vector<8x128xf32>
      %cst_5 = arith.constant 0.000000e+00 : f32
      %18 = vector.broadcast %cst_5 : f32 to vector<8x8x128xf32>
      %c0_6 = arith.constant 0 : index
      %c0_7 = arith.constant 0 : index
      %c0_8 = arith.constant 0 : index
      %19 = arith.index_cast %13 : i32 to index
      %20 = vector.load %arg2[%c0_6, %c0_7, %c0_8, %19] : memref<2x1x64x256xbf16, #tpu.memory_space<vmem>>, vector<1x1x64x128xbf16>
      %21 = vector.shape_cast %20 : vector<1x1x64x128xbf16> to vector<64x128xbf16>
      %22 = arith.extf %21 : vector<64x128xbf16> to vector<64x128xf32>
      %23 = vector.shape_cast %22 : vector<64x128xf32> to vector<8x8x128xf32>
      %24 = vector.shape_cast %16 : vector<8x128xf32> to vector<8x1x128xf32>
      %25 = vector.broadcast %24 : vector<8x1x128xf32> to vector<8x8x128xf32>
      %26 = arith.subf %25, %23 : vector<8x8x128xf32>
      %27 = arith.mulf %26, %26 : vector<8x8x128xf32>
      %cst_9 = arith.constant dense<0.000000e+00> : vector<8x128xf32>
      %28 = vector.multi_reduction <add>, %27, %cst_9 [0] : vector<8x8x128xf32> to vector<8x128xf32>
      %cst_10 = arith.constant 5.000000e-01 : f32
      %29 = vector.broadcast %cst_10 : f32 to vector<8x128xf32>
      %30 = arith.mulf %28, %29 : vector<8x128xf32>
      %cst_11 = arith.constant dense<0xFF800000> : vector<128xf32>
      %31 = vector.multi_reduction <maximumf>, %30, %cst_11 [0] : vector<8x128xf32> to vector<128xf32>
      %32 = vector.shape_cast %31 : vector<128xf32> to vector<1x128xf32>
      %33 = vector.broadcast %32 : vector<1x128xf32> to vector<8x128xf32>
      %34 = arith.subf %30, %33 : vector<8x128xf32>
      %35 = math.exp %34 : vector<8x128xf32>
      %cst_12 = arith.constant dense<0.000000e+00> : vector<128xf32>
      %36 = vector.multi_reduction <add>, %35, %cst_12 [0] : vector<8x128xf32> to vector<128xf32>
      %37 = vector.shape_cast %36 : vector<128xf32> to vector<1x128xf32>
      %38 = vector.broadcast %37 : vector<1x128xf32> to vector<8x128xf32>
      %39 = arith.divf %35, %38 : vector<8x128xf32>
      %cst_13 = arith.constant 0.353553385 : f32
      %40 = vector.broadcast %cst_13 : f32 to vector<8x128xf32>
      %41 = arith.mulf %39, %40 : vector<8x128xf32>
      %42 = arith.addf %17, %41 : vector<8x128xf32>
      %43 = vector.shape_cast %41 : vector<8x128xf32> to vector<1x8x128xf32>
      %44 = vector.broadcast %43 : vector<1x8x128xf32> to vector<8x8x128xf32>
      %45 = arith.mulf %44, %27 : vector<8x8x128xf32>
      %46 = arith.addf %18, %45 : vector<8x8x128xf32>
      %c1_14 = arith.constant 1 : index
      %c0_15 = arith.constant 0 : index
      %c0_16 = arith.constant 0 : index
      %47 = arith.index_cast %13 : i32 to index
      %48 = vector.load %arg2[%c1_14, %c0_15, %c0_16, %47] : memref<2x1x64x256xbf16, #tpu.memory_space<vmem>>, vector<1x1x64x128xbf16>
      %49 = vector.shape_cast %48 : vector<1x1x64x128xbf16> to vector<64x128xbf16>
      %50 = arith.extf %49 : vector<64x128xbf16> to vector<64x128xf32>
      %51 = vector.shape_cast %50 : vector<64x128xf32> to vector<8x8x128xf32>
      %52 = vector.shape_cast %16 : vector<8x128xf32> to vector<8x1x128xf32>
      %53 = vector.broadcast %52 : vector<8x1x128xf32> to vector<8x8x128xf32>
      %54 = arith.subf %53, %51 : vector<8x8x128xf32>
      %55 = arith.mulf %54, %54 : vector<8x8x128xf32>
      %cst_17 = arith.constant dense<0.000000e+00> : vector<8x128xf32>
      %56 = vector.multi_reduction <add>, %55, %cst_17 [0] : vector<8x8x128xf32> to vector<8x128xf32>
      %cst_18 = arith.constant 5.000000e-01 : f32
      %57 = vector.broadcast %cst_18 : f32 to vector<8x128xf32>
      %58 = arith.mulf %56, %57 : vector<8x128xf32>
      %cst_19 = arith.constant dense<0xFF800000> : vector<128xf32>
      %59 = vector.multi_reduction <maximumf>, %58, %cst_19 [0] : vector<8x128xf32> to vector<128xf32>
      %60 = vector.shape_cast %59 : vector<128xf32> to vector<1x128xf32>
      %61 = vector.broadcast %60 : vector<1x128xf32> to vector<8x128xf32>
      %62 = arith.subf %58, %61 : vector<8x128xf32>
      %63 = math.exp %62 : vector<8x128xf32>
      %cst_20 = arith.constant dense<0.000000e+00> : vector<128xf32>
      %64 = vector.multi_reduction <add>, %63, %cst_20 [0] : vector<8x128xf32> to vector<128xf32>
      %65 = vector.shape_cast %64 : vector<128xf32> to vector<1x128xf32>
      %66 = vector.broadcast %65 : vector<1x128xf32> to vector<8x128xf32>
      %67 = arith.divf %63, %66 : vector<8x128xf32>
      %cst_21 = arith.constant 0.353553385 : f32
      %68 = vector.broadcast %cst_21 : f32 to vector<8x128xf32>
      %69 = arith.mulf %67, %68 : vector<8x128xf32>
      %70 = arith.addf %42, %69 : vector<8x128xf32>
      %71 = vector.shape_cast %69 : vector<8x128xf32> to vector<1x8x128xf32>
      %72 = vector.broadcast %71 : vector<1x8x128xf32> to vector<8x8x128xf32>
      %73 = arith.mulf %72, %55 : vector<8x8x128xf32>
      %74 = arith.addf %46, %73 : vector<8x8x128xf32>
      %cst_22 = arith.constant 1.000000e+00 : f32
      %75 = vector.broadcast %cst_22 : f32 to vector<8x128xf32>
      %76 = arith.divf %75, %70 : vector<8x128xf32>
      %77 = vector.shape_cast %76 : vector<8x128xf32> to vector<1x8x128xf32>
      %78 = vector.broadcast %77 : vector<1x8x128xf32> to vector<8x8x128xf32>
      %79 = arith.mulf %74, %78 : vector<8x8x128xf32>
      %80 = vector.extract_strided_slice %79 {offsets = [0, 0, 0], sizes = [1, 8, 128], strides = [1, 1, 1]} : vector<8x8x128xf32> to vector<1x8x128xf32>
      %81 = vector.shape_cast %80 : vector<1x8x128xf32> to vector<8x128xf32>
      %82 = vector.broadcast %0 : f32 to vector<8x128xf32>
      %83 = arith.mulf %82, %81 : vector<8x128xf32>
      %84 = vector.broadcast %8 : f32 to vector<8x128xf32>
      %85 = arith.addf %84, %83 : vector<8x128xf32>
      %86 = vector.extract_strided_slice %79 {offsets = [1, 0, 0], sizes = [1, 8, 128], strides = [1, 1, 1]} : vector<8x8x128xf32> to vector<1x8x128xf32>
      %87 = vector.shape_cast %86 : vector<1x8x128xf32> to vector<8x128xf32>
      %88 = vector.broadcast %1 : f32 to vector<8x128xf32>
      %89 = arith.mulf %88, %87 : vector<8x128xf32>
      %90 = arith.addf %85, %89 : vector<8x128xf32>
      %91 = vector.extract_strided_slice %79 {offsets = [2, 0, 0], sizes = [1, 8, 128], strides = [1, 1, 1]} : vector<8x8x128xf32> to vector<1x8x128xf32>
      %92 = vector.shape_cast %91 : vector<1x8x128xf32> to vector<8x128xf32>
      %93 = vector.broadcast %2 : f32 to vector<8x128xf32>
      %94 = arith.mulf %93, %92 : vector<8x128xf32>
      %95 = arith.addf %90, %94 : vector<8x128xf32>
      %96 = vector.extract_strided_slice %79 {offsets = [3, 0, 0], sizes = [1, 8, 128], strides = [1, 1, 1]} : vector<8x8x128xf32> to vector<1x8x128xf32>
      %97 = vector.shape_cast %96 : vector<1x8x128xf32> to vector<8x128xf32>
      %98 = vector.broadcast %3 : f32 to vector<8x128xf32>
      %99 = arith.mulf %98, %97 : vector<8x128xf32>
      %100 = arith.addf %95, %99 : vector<8x128xf32>
      %101 = vector.extract_strided_slice %79 {offsets = [4, 0, 0], sizes = [1, 8, 128], strides = [1, 1, 1]} : vector<8x8x128xf32> to vector<1x8x128xf32>
      %102 = vector.shape_cast %101 : vector<1x8x128xf32> to vector<8x128xf32>
      %103 = vector.broadcast %4 : f32 to vector<8x128xf32>
      %104 = arith.mulf %103, %102 : vector<8x128xf32>
      %105 = arith.addf %100, %104 : vector<8x128xf32>
      %106 = vector.extract_strided_slice %79 {offsets = [5, 0, 0], sizes = [1, 8, 128], strides = [1, 1, 1]} : vector<8x8x128xf32> to vector<1x8x128xf32>
      %107 = vector.shape_cast %106 : vector<1x8x128xf32> to vector<8x128xf32>
      %108 = vector.broadcast %5 : f32 to vector<8x128xf32>
      %109 = arith.mulf %108, %107 : vector<8x128xf32>
      %110 = arith.addf %105, %109 : vector<8x128xf32>
      %111 = vector.extract_strided_slice %79 {offsets = [6, 0, 0], sizes = [1, 8, 128], strides = [1, 1, 1]} : vector<8x8x128xf32> to vector<1x8x128xf32>
      %112 = vector.shape_cast %111 : vector<1x8x128xf32> to vector<8x128xf32>
      %113 = vector.broadcast %6 : f32 to vector<8x128xf32>
      %114 = arith.mulf %113, %112 : vector<8x128xf32>
      %115 = arith.addf %110, %114 : vector<8x128xf32>
      %116 = vector.extract_strided_slice %79 {offsets = [7, 0, 0], sizes = [1, 8, 128], strides = [1, 1, 1]} : vector<8x8x128xf32> to vector<1x8x128xf32>
      %117 = vector.shape_cast %116 : vector<1x8x128xf32> to vector<8x128xf32>
      %118 = vector.broadcast %7 : f32 to vector<8x128xf32>
      %119 = arith.mulf %118, %117 : vector<8x128xf32>
      %120 = arith.addf %115, %119 : vector<8x128xf32>
      %121 = vector.shape_cast %79 : vector<8x8x128xf32> to vector<64x128xf32>
      %122 = arith.truncf %121 : vector<64x128xf32> to vector<64x128xbf16>
      %c0_23 = arith.constant 0 : index
      %c0_24 = arith.constant 0 : index
      %123 = arith.index_cast %13 : i32 to index
      %124 = vector.load %arg6[%c0_23, %c0_24, %123] : memref<1x64x256xbf16, #tpu.memory_space<vmem>>, vector<1x64x128xbf16>
      %125 = vector.shape_cast %124 : vector<1x64x128xbf16> to vector<64x128xbf16>
      %126 = vector.shape_cast %122 : vector<64x128xbf16> to vector<1x64x128xbf16>
      tpu.vector_store %arg6[%c0_23, %c0_24, %123], %126 {strides = array<i32>} : memref<1x64x256xbf16, #tpu.memory_space<vmem>>, vector<1x64x128xbf16>,
      %cst_25 = arith.constant dense<0xFF800000> : vector<128xf32>
      %127 = vector.multi_reduction <maximumf>, %120, %cst_25 [0] : vector<8x128xf32> to vector<128xf32>
      %128 = vector.shape_cast %127 : vector<128xf32> to vector<1x128xf32>
      %129 = vector.broadcast %128 : vector<1x128xf32> to vector<8x128xf32>
      %130 = arith.subf %120, %129 : vector<8x128xf32>
      %131 = math.exp %130 : vector<8x128xf32>
      %cst_26 = arith.constant dense<0.000000e+00> : vector<128xf32>
      %132 = vector.multi_reduction <add>, %131, %cst_26 [0] : vector<8x128xf32> to vector<128xf32>
      %133 = vector.shape_cast %132 : vector<128xf32> to vector<1x128xf32>
      %134 = vector.broadcast %133 : vector<1x128xf32> to vector<8x128xf32>
      %135 = arith.divf %131, %134 : vector<8x128xf32>
      %c0_27 = arith.constant 0 : index
      %c0_28 = arith.constant 0 : index
      %136 = arith.index_cast %13 : i32 to index
      %137 = vector.load %arg7[%c0_27, %c0_28, %136] : memref<1x8x256xf32, #tpu.memory_space<vmem>>, vector<1x8x128xf32>
      %138 = vector.shape_cast %137 : vector<1x8x128xf32> to vector<8x128xf32>
      %139 = vector.shape_cast %135 : vector<8x128xf32> to vector<1x8x128xf32>
      tpu.vector_store %arg7[%c0_27, %c0_28, %136], %139 {strides = array<i32>} : memref<1x8x256xf32, #tpu.memory_space<vmem>>, vector<1x8x128xf32>,
      %140 = tpu.iota {dimensions = array<i32: 0>} : vector<8x128xi32>
      %141 = vector.broadcast %128 : vector<1x128xf32> to vector<8x128xf32>
      %142 = arith.cmpf oeq, %120, %141 : vector<8x128xf32>
      %c8_i32 = arith.constant 8 : i32
      %143 = vector.broadcast %c8_i32 : i32 to vector<8x128xi32>
      %144 = arith.select %142, %140, %143 : vector<8x128xi1>, vector<8x128xi32>
      %cst_29 = arith.constant dense<2147483647> : vector<128xi32>
      %145 = vector.multi_reduction <minsi>, %144, %cst_29 [0] : vector<8x128xi32> to vector<128xi32>
      %146 = vector.shape_cast %145 : vector<128xi32> to vector<1x128xi32>
      %147 = vector.broadcast %146 : vector<1x128xi32> to vector<8x128xi32>
      %148 = arith.cmpi eq, %140, %147 : vector<8x128xi32>
      %c0_30 = arith.constant 0 : index
      %c0_31 = arith.constant 0 : index
      %149 = arith.index_cast %13 : i32 to index
      %150 = vector.load %arg4[%c0_30, %c0_31, %149] : memref<1x8x256xf32, #tpu.memory_space<vmem>>, vector<1x8x128xf32>
      %151 = vector.shape_cast %150 : vector<1x8x128xf32> to vector<8x128xf32>
      %cst_32 = arith.constant 0.000000e+00 : f32
      %152 = vector.broadcast %cst_32 : f32 to vector<8x128xf32>
      %153 = arith.select %148, %151, %152 : vector<8x128xi1>, vector<8x128xf32>
      %cst_33 = arith.constant dense<0.000000e+00> : vector<128xf32>
      %154 = vector.multi_reduction <add>, %153, %cst_33 [0] : vector<8x128xf32> to vector<128xf32>
      %155 = vector.shape_cast %154 : vector<128xf32> to vector<1x128xf32>
      %c0_34 = arith.constant 0 : index
      %c0_35 = arith.constant 0 : index
      %156 = arith.index_cast %13 : i32 to index
      %157 = vector.load %arg8[%c0_34, %c0_35, %156] : memref<1x1x256xf32, #tpu.memory_space<vmem>>, vector<1x1x128xf32>
      %158 = vector.shape_cast %157 : vector<1x1x128xf32> to vector<1x128xf32>
      %159 = vector.shape_cast %155 : vector<1x128xf32> to vector<1x1x128xf32>
      tpu.vector_store %arg8[%c0_34, %c0_35, %156], %159 {strides = array<i32>} : memref<1x1x256xf32, #tpu.memory_space<vmem>>, vector<1x1x128xf32>,
    }
    %c2_i32_0 = arith.constant 2 : i32
    return
  }
  func.func @transform_0(%arg0: i32, %arg1: i32) -> (i32, i32, i32, i32) {
    %c0_i32 = arith.constant 0 : i32
    %c0_i32_0 = arith.constant 0 : i32
    %c0_i32_1 = arith.constant 0 : i32
    return %c0_i32, %arg0, %c0_i32_0, %arg1 : i32, i32, i32, i32
  }
  func.func @transform_1(%arg0: i32, %arg1: i32) -> (i32, i32, i32) {
    %c0_i32 = arith.constant 0 : i32
    %c0_i32_0 = arith.constant 0 : i32
    return %arg0, %c0_i32, %arg1 : i32, i32, i32
  }
  func.func @transform_2(%arg0: i32, %arg1: i32) -> (i32, i32, i32) {
    %c0_i32 = arith.constant 0 : i32
    %c0_i32_0 = arith.constant 0 : i32
    return %arg0, %c0_i32, %arg1 : i32, i32, i32
  }
  func.func @transform_3(%arg0: i32, %arg1: i32) -> i32 {
    %c0_i32 = arith.constant 0 : i32
    %c0_i32_0 = arith.constant 0 : i32
    return %c0_i32 : i32
  }
  func.func @transform_4(%arg0: i32, %arg1: i32) -> (i32, i32, i32) {
    %c0_i32 = arith.constant 0 : i32
    %c0_i32_0 = arith.constant 0 : i32
    return %arg0, %c0_i32, %arg1 : i32, i32, i32
  }
  func.func @transform_5(%arg0: i32, %arg1: i32) -> (i32, i32, i32) {
    %c0_i32 = arith.constant 0 : i32
    %c0_i32_0 = arith.constant 0 : i32
    return %arg0, %c0_i32, %arg1 : i32, i32, i32
  }
  func.func @transform_6(%arg0: i32, %arg1: i32) -> (i32, i32, i32) {
    %c0_i32 = arith.constant 0 : i32
    %c0_i32_0 = arith.constant 0 : i32
    return %arg0, %c0_i32, %arg1 : i32, i32, i32
  }
}

</mosaic_0001>

<bundles_post_ra>
// kernel: custom-call.31
= control target key start
LH: loop header
LB: loop body
LE: loop exit
PB: predicated region body
PF: predicated region fallthrough
CT: control target
= control target key end

     0   :  { %5 = vsyncpa [#allocation6], 0  ;;  %s896_s0 = inlined_call_operand.vmem [shape: f32[2,4,4], index: 0, kind: input, shape index: {}]   ;;  %s897_s1 = inlined_call_operand.vmem [shape: f32[2,4,4], index: 1, kind: output, shape index: {0}]   ;;  %s898_s2 = inlined_call_operand.hbm [shape: s32[2,4], index: 2, kind: output, shape index: {1}]   ;;  %s899_s3 = inlined_call_operand.vmem [shape: s32[2,4], index: 3, kind: output, shape index: {2}]  }
   0x1   :  { %7 = vsyncpa [#allocation6 + $0x1], 0  ;;  %s715_s12 = smov 0   ;;  %s717_s13 = smov 0  }
   0x2   :  { %s719_s14 = smov 0   ;;  %s721_s15 = smov 0  }
   0x3 LB: > { %s736_s16 = sadd.s32 4294967295, %s687_s15   ;;  %s550_s17 = sadd.s32 4294967294, %s687_s15   ;;  %s687_s15 = sphi %s721_s15, %s907_s15   ;;  %s683_s14 = sphi %s719_s14, %s906_s14   ;;  %s679_s13 = sphi %s717_s13, %s905_s13   ;;  %s675_s12 = sphi %s715_s12, %s904_s12  }
   0x4   : > { %s740_s18 = sadd.s32 1, %s687_s15   ;;  %s17_s19 = sshrl.u32 %s687_s15, 3 }
   0x5   : > { %s18_s20 = sshrl.u32 %s740_s18, 3  ;;  %s22_s21 = sadd.s32 1, %s683_s14 }
   0x6   : > { %s19_s22 = ssub.s32 %s17_s19, %s18_s20  ;;  %p32_p0 = scmp.ne.s32.totalorder %s683_s14, %s679_s13 }
   0x7   : > { %p20_p1 = scmp.eq.s32.totalorder %s19_s22, 0  ;;  %p33_p2 = scmp.eq.s32.totalorder %s736_s16, 1 }
   0x8   : > { %p38_p3 = scmp.ne.s32.totalorder %s679_s13, %s675_s12  ;;  %p39_p4 = scmp.eq.s32.totalorder %s550_s17, 1 }
   0x9   : > { %s751_s23 = scalar_select %p20_p1, %s683_s14, %s22_s21  }
   0xa   : > { %p753_p5 = por %p33_p2, %p32_p0  ;;  %p757_p6 = por %p39_p4, %p38_p3 }
   0xb   : > { %p552_p7 = scmp.ge.s32.totalorder %s687_s15, 2 }
   0xc   : > { %s85_s26 = sand.u32 (!%p552_p7), 1, %s687_s15   ;;  %s554_s27 = sshll.u32 (!%p552_p7), %s687_s15, 2 }
   0xd   : > { %83 = sbr.rel (%p552_p7) target bundleno = 20 (0x14), region = 16  ;;  %s553_s28 = sshll.u32 (!%p552_p7), %s85_s26, 2 }
   0xe   : > { %s89_s4 = scalar_lea.vmem (!%p552_p7), %s896_s0, %s554_s27  ;;  %s87_s5 = scalar_lea.vmem (!%p552_p7), [#allocation1], %s553_s28 }
   0xf   : > { %v105_v0 = vld [vmem:[%s89_s4] sm:$0xf] (!%p552_p7) }
  0x10   : > { %106 = vst [vmem:[%s87_s5] sm:$0xf] (!%p552_p7), %v105_v0 }
  0x14 PF: > { %p555_p8 = scmp.ge.s32.totalorder %s687_s15, 1  ;;  %p122_p9 = scmp.lt.s32.totalorder %s687_s15, 3 }
  0x16   : > { %p123_p10 = pnand %p555_p8, %p122_p9 }
  0x18   : > { %126 = sbr.rel (%p123_p10) target bundleno = 451 (0x1c3), region = 50 }
  0x1f   : > { %s133_s6 = sand.u32 1, %s736_s16   ;;  %s144_s7 = sand.u32 1, %s679_s13   ;;  %v166_v1 = vlaneseq  ;;  %v693_v4 = vmov 0  }
  0x20   : > { %s773_s8 = sshll.u32 %s133_s6, 2  ;;  %s777_s9 = sshll.u32 %s144_s7, 1 }
  0x21   : > { %v780_v2 = vshrl.u32 %v166_v1, 7  ;;  %s135_s10 = scalar_lea.vmem [#allocation1], %s773_s8  ;;  %s161_s11 = sand.u32 7, %s736_s16  }
  0x22   : > { %v155_v3 = vld [vmem:[%s135_s10] sm:$0xf]  ;;  %s785_s17 = scalar_lea.vmem [#allocation4], %s161_s11  ;;  %s139_s19 = scalar_lea.vmem [#allocation3], %s773_s8 }
  0x23   : > { %156 = vst [vmem:[#allocation0] sm:$0xf] %v155_v3  ;;  %170 = vst [vmem:[#allocation9] sm:$0xff] %v780_v2  ;;  %s146_s20 = scalar_lea.vmem [#allocation5], %s777_s9  ;;  %s152_s21 = scalar_lea.vmem [#allocation8], %s777_s9 }
  0x24   : > { %165 = vst [vmem:[%s785_s17] sm:$0x1] %v693_v4  ;;  %s791_s22 = scalar_lea.vmem [#allocation7], %s161_s11  ;;  %s793_s26 = smov 0  }
  0x2a   : > { %v159_v5 = vld [vmem:[#allocation0] sm:$0xff] }
  0x2b   : > { %160 = vst [vmem:[#allocation2] sm:$0xff] %v159_v5 }
  0x2c LB: >> { %vm186_vm0 = vcmp.lt.s32.totalorder %v780_v2, 4  ;;  %v800_v8 = vstv %s691_s26  ;;  %s227_s27 = ssub.s32 128, %s691_s26  ;;  %v233_v38 = vand.u32 127, %v166_v1  ;;  %v236_v40 = vld [vmem:[%s785_s17] ss:$0 sm:$0xff]  ;;  %s239_s28 = scalar_lea.vmem [#allocation2], %s691_s26  ;;  %s691_s26 = sphi %s793_s26, %s176_s26  }
  0x2d   : >> { %vm185_vm1 = vcmp.ge.s32.totalorder %v780_v2, %v800_v8  ;;  %s245_s30 = scalar_lea.vmem [#allocation9], %s691_s26  ;;  %vm265_vm15 = vcmp.gt.s32.totalorder %v780_v2, %v800_v8  ;;  %s176_s26 = sadd.s32 1, %s691_s26  }
  0x2e   : >> { %vm187_vm3 = vmand %vm185_vm1, %vm186_vm0  ;;  %vm257_vm12 = vcmp.gt.s32.totalorder %v233_v38, %v800_v8  ;;  %vm234_vm13 = vcmp.eq.s32.totalorder %v233_v38, %v800_v8  ;;  %v247_v42 = vld [vmem:[%s245_s30] ss:$0 sm:$0xff]  ;;  %p173_p11 = scmp.ge.s32.totalorder %s176_s26, 4  }
  0x2f   : >> { %vm269_vm1 = vmand %vm265_vm15, %vm234_vm13  ;;  %s900_s6 = sshrl.u32 (%p173_p11), %s736_s16, 3  ;;  %s564_s10 = sshll.u32 (%p173_p11), %s736_s16, 2 }
  0x30   : > { %s565_s11 = sshll.u32 (%p173_p11), %s900_s6, 5 }
  0x32   : >> { %v181_v6 = vld [vmem:[#allocation2] sm:$0xff]  ;;  %v241_v41 = vld [vmem:[%s239_s28] ss:$0 sm:$0xff] }
  0x33   : >> { %v182_v7 = vand.u32 2147483647, %v181_v6 }
  0x35   : >> { %vm560_vm2 = vcmp.gt.f32.partialorder %v182_v7, -inf }
  0x36   : >> { %vm189_vm4 = vmand %vm187_vm3, %vm560_vm2 }
  0x37   : >> { %v190_v9 = vsel %vm189_vm4, %v780_v2, %v800_v8  ;;  %v191_v10 = vsel %vm189_vm4, %v182_v7, -inf }
  0x38   : >> { %v192_v11 = vrot.slane %v191_v10, 1  ;;  %v193_v12 = vrot.slane %v190_v9, 1 }
  0x3a   : >> { %vm194_vm5 = vcmp.ge.f32.partialorder %v192_v11, %v191_v10  ;;  %v197_v13 = vrot.slane %v192_v11, 1  ;;  %v198_v14 = vrot.slane %v193_v12, 1 }
  0x3b   : >> { %v195_v15 = vsel %vm194_vm5, %v192_v11, %v191_v10  ;;  %v196_v16 = vsel %vm194_vm5, %v193_v12, %v190_v9 }
  0x3c   : >> { %vm199_vm6 = vcmp.ge.f32.partialorder %v197_v13, %v195_v15  ;;  %v202_v17 = vrot.slane %v197_v13, 1  ;;  %v203_v18 = vrot.slane %v198_v14, 1 }
  0x3d   : >> { %v200_v19 = vsel %vm199_vm6, %v197_v13, %v195_v15  ;;  %v201_v20 = vsel %vm199_vm6, %v198_v14, %v196_v16 }
  0x3e   : >> { %vm204_vm7 = vcmp.ge.f32.partialorder %v202_v17, %v200_v19  ;;  %v207_v21 = vrot.slane %v202_v17, 1  ;;  %v208_v22 = vrot.slane %v203_v18, 1 }
  0x3f   : >> { %v205_v23 = vsel %vm204_vm7, %v202_v17, %v200_v19  ;;  %v206_v24 = vsel %vm204_vm7, %v203_v18, %v201_v20 }
  0x40   : >> { %vm209_vm8 = vcmp.ge.f32.partialorder %v207_v21, %v205_v23  ;;  %v212_v25 = vrot.slane %v207_v21, 1  ;;  %v213_v26 = vrot.slane %v208_v22, 1 }
  0x41   : >> { %v210_v27 = vsel %vm209_vm8, %v207_v21, %v205_v23  ;;  %v211_v28 = vsel %vm209_vm8, %v208_v22, %v206_v24 }
  0x42   : >> { %vm214_vm9 = vcmp.ge.f32.partialorder %v212_v25, %v210_v27  ;;  %v217_v29 = vrot.slane %v212_v25, 1  ;;  %v218_v30 = vrot.slane %v213_v26, 1 }
  0x43   : >> { %v215_v31 = vsel %vm214_vm9, %v212_v25, %v210_v27  ;;  %v216_v32 = vsel %vm214_vm9, %v213_v26, %v211_v28 }
  0x44   : >> { %vm219_vm10 = vcmp.ge.f32.partialorder %v217_v29, %v215_v31  ;;  %v222_v33 = vrot.slane %v217_v29, 1  ;;  %v223_v34 = vrot.slane %v218_v30, 1 }
  0x45   : >> { %v220_v35 = vsel %vm219_vm10, %v217_v29, %v215_v31  ;;  %v221_v36 = vsel %vm219_vm10, %v218_v30, %v216_v32 }
  0x46   : >> { %vm224_vm11 = vcmp.ge.f32.partialorder %v222_v33, %v220_v35 }
  0x47   : >> { %v226_v37 = vsel %vm224_vm11, %v223_v34, %v221_v36 }
  0x48   : >> { %228 = vrot.lane.b32.xlu0 %v226_v37, %s227_s27  ;;  %s357_s27 = scalar_lea.vmem (%p173_p11), %s897_s1, %s564_s10 }
  0xba   : >> { %v229_v39 = vpop.permute.xlu0 %228 }
  0xbb   : >> { %569 = vpush %v229_v39 }
  0xec   : >> { %s570_s29 = spop %569 }
  0xed   : >> { %v235_v43 = vstv %s570_s29  ;;  %s240_s4 = scalar_lea.vmem [#allocation2], %s570_s29  ;;  %s246_s5 = scalar_lea.vmem [#allocation9], %s570_s29 }
  0xee   : >> { %v242_v44 = vld [vmem:[%s240_s4] ss:$0 sm:$0xff]  ;;  %v237_v46 = vsel %vm234_vm13, %v235_v43, %v236_v40 }
  0xef   : >> { %v248_v45 = vld [vmem:[%s246_s5] ss:$0 sm:$0xff]  ;;  %243 = vst [vmem:[%s240_s4] sm:$0x1] %v241_v41  ;;  %vm251_vm14 = vcmp.ne.f32.partialorder %v242_v44, 0.0  ;;  %238 = vst [vmem:[%s785_s17] sm:$0x1] %v237_v46  ;;  %v258_v53 = vsel %vm257_vm12, %v242_v44, 0.0 }
  0xf0   : >> { %249 = vst [vmem:[%s246_s5] sm:$0x1] %v247_v42  ;;  %244 = vst [vmem:[%s239_s28] sm:$0x1] %v242_v44  ;;  %s399_s4 = sshll.u32 (%p173_p11), %s146_s20, 4  ;;  %s348_s5 = scalar_lea.sflag (%p173_p11), [#allocation6], %s144_s7  ;;  %s400_s4 = int_to_ptr.vmem [resolvable:$true] %s399_s4 }
  0xf1   : >> { %250 = vst [vmem:[%s245_s30] sm:$0x1] %v248_v45  ;;  %vm252_vm0 = vmand %vm234_vm13, %vm251_vm14  ;;  %s843_s30 = scalar_lea.hbm (%p173_p11), %s898_s2, %s565_s11  ;;  %s621_s6 = scalar_lea.vmem (%p173_p11), %s400_s4, 32 }
  0xf2   : >> { %v253_v47 = vsel %vm252_vm0, %v242_v44, 1.0  ;;  %p622_p12 = scmp.ne.s32.totalorder (%p173_p11), %s400_s4, %s621_s6  ;;  %s694_s17 = smov (%p173_p11), [#allocation5]  }
  0xf3   : >> { %v266_v48 = vsel %vm265_vm15, %v253_v47, 1.0  ;;  %s625_s10 = sshll.u32 (%p173_p11), %s694_s17, 4  ;;  %s626_s10 = int_to_ptr.vmem [resolvable:$false] %s625_s10 }
  0xf4   : >> { %619 = vrcp.f32 %v266_v48  ;;  %p623_p13 = pnand (%p173_p11), %p622_p12, %p753_p5  ;;  %s627_s8 = scalar_lea.vmem (%p173_p11), %s626_s10, 64 }
  0xf5   : > { %p628_p1 = scmp.lt.s32.totalorder (%p173_p11), %s400_s4, %s626_s10  ;;  %p629_p2 = scmp.lt.s32.totalorder (%p173_p11), %s627_s8, %s621_s6 }
  0xf6   : > { %v334_v59 = vld [vmem:[#allocation4] sm:$0x3] (%p173_p11)  ;;  %p624_p0 = pneg (%p173_p11), %p623_p13 }
  0xf7   : >> { %v262_v50 = vld [vmem:[#allocation2] sm:$0xff]  ;;  %336 = vst [vmem:[%s146_s20] sm:$0x3] (%p173_p11), %v334_v59  ;;  %p630_p3 = por (%p173_p11), %p629_p2, %p628_p1 }
  0xf8   : > { %v276_v57 = vld [vmem:[#allocation9] sm:$0xff] (%p173_p11) }
  0xf9   : > { %p631_p4 = pnand (%p173_p11), %p630_p3, %p624_p0 }
  0xfe   : >> { %v620_v49 = vpop.eup %619 }
  0xff   : >> { %v268_v51 = vmul.f32 %v620_v49, %v262_v50 }
 0x101   : >> { %v270_v52 = vsel %vm269_vm1, %v268_v51, 0.0 }
 0x102   : >> { %271 = vadd.xlane.f32.xlu0 %v270_v52 }
 0x12f   : > { %292 = vxpose.xlu0.b32.start.end [1/1] (short) (narrow) (%p173_p11), %v276_v57, 8 }
 0x18e   : > { %175 = sbr.rel (!%p173_p11) target bundleno = 44 (0x2c), region = 202 }
 0x18f   : >> { %v272_v54 = vpop.xlane.xlu0 %271 }
 0x190   : >> { %v273_v55 = vmul.f32 %v272_v54, %v258_v53 }
 0x192   : >> { %v274_v56 = vsub.f32 %v268_v51, %v273_v55 }
 0x194   : >> { %275 = vst [vmem:[#allocation2] sm:$0xff] %v274_v56 }
 0x19b   : > { %v328_v58 = vld [vmem:[#allocation2] sm:$0xf] }
 0x19c   : > { %330 = vst [vmem:[%s139_s19] sm:$0xf] %v328_v58 }
 0x1a3   : > { %v373_v60 = vld [vmem:[%s139_s19] sm:$0xf] }
 0x1a4   : > { %374 = vst [vmem:[%s357_s27] sm:$0xf] %v373_v60 }
 0x1a5   : > { %634 = shalt.err (!%p631_p4)
}
 0x1a6   : > { %s635_s7 = scalar_lea.hbm %s843_s30, 32  ;;  %s639_s11 = scalar_lea.hbm %s898_s2, 32 }
 0x1a7   : > { %p636_p8 = scmp.ne.s32.totalorder %s843_s30, %s635_s7  ;;  %p640_p11 = scmp.lt.u32.totalorder %s843_s30, %s898_s2 }
 0x1a8   : > { %p641_p12 = scmp.lt.u32.totalorder %s639_s11, %s635_s7  ;;  %p643_p0 = scmp.lt.u32.totalorder %s635_s7, %s843_s30 }
 0x1a9   : > { %p637_p9 = pnand %p636_p8, %p753_p5 }
 0x1aa   : > { %p642_p13 = por %p641_p12, %p640_p11 }
 0x1ab   : > { %p638_p10 = pneg %p637_p9 }
 0x1ac   : > { %p644_p1 = por %p643_p0, %p642_p13 }
 0x1ae   : > { %p645_p2 = pnand %p644_p1, %p638_p10 }
 0x1b0   : > { %648 = shalt.err (!%p645_p2)
}
 0x1b1   : > { %571 = dma.vmem_to_hbm [thread:$0]  (%p753_p5), %s400_s4, 32, %s843_s30, %s348_s5   ;;  %v308_v61 = vpop.trf.xlu0 }
 0x1b2   : > { %324 = vst [vmem:[%s791_s22] sm:$0x1] %v308_v61  ;;  %s903_s6 = sshrl.u32 (%p753_p5), %s736_s16, 3 }
 0x1b3   : > { %s566_s28 = sshll.u32 (%p753_p5), %s903_s6, 1 }
 0x1b4   : > { %405 = sbr.rel (!%p753_p5) target bundleno = 451 (0x1c3), region = 96  ;;  %s408_s10 = scalar_lea.vmem (%p753_p5), %s899_s3, %s566_s28 }
 0x1b9   : > { %v340_v62 = vld [vmem:[#allocation7] sm:$0x3] }
 0x1ba   : > { %342 = vst [vmem:[%s152_s21] sm:$0x3] %v340_v62 }
 0x1c1   : > { %v424_v63 = vld [vmem:[%s152_s21] sm:$0x3] }
 0x1c2   : > { %425 = vst [vmem:[%s408_s10] sm:$0x3] %v424_v63 }
 0x1c3 PF: > { %s452_s22 = sand.u32 1, %s675_s12   ;;  %p574_p5 = pnand %p552_p7, %p757_p6 }
 0x1c4   : > { %s453_s24 = scalar_lea.sflag [#allocation6], %s452_s22 }
 0x1c5   : > { %670 = dma.done.wait (!%p574_p5), %s453_s24, 32  }
 0x1c6   : > { %672 = vsyncadd (!%p574_p5), %s453_s24, 4294967264  ;;  %p10_p3 = scmp.ge.s32.totalorder %s740_s18, 4   ;;  %s904_s12 = smov %s679_s13 }
 0x1c7   : > { %s905_s13 = smov %s683_s14  ;;  %s906_s14 = smov %s751_s23 }
 0x1c8   : > { %s907_s15 = smov %s740_s18  ;;  %12 = sbr.rel (!%p10_p3) target bundleno = 3 (0x3), region = 213 }
 0x1cf   :  { %465 = vsyncpa [#allocation6], 1 }
 0x1d0   :  { %467 = vsyncpa [#allocation6 + $0x1], 1 }

// kernel: custom-call.33
= control target key start
LH: loop header
LB: loop body
LE: loop exit
PB: predicated region body
PF: predicated region fallthrough
CT: control target
= control target key end

     0   :  { %s353_s6 = smov 0   ;;  %s355_s7 = smov 0   ;;  %s400_s0 = inlined_call_operand.vmem [shape: f32[2,1,4,4], index: 0, kind: input, shape index: {}]   ;;  %s401_s1 = inlined_call_operand.vmem [shape: f32[2,1,4,4], index: 1, kind: output, shape index: {}]  }
   0x1   :  { %s357_s8 = smov 0  }
   0x2 LB: > { %s279_s9 = sadd.s32 4294967295, %s340_s8   ;;  %s33_s10 = sadd.s32 1, %s336_s7  ;;  %s340_s8 = sphi %s357_s8, %s7_s8   ;;  %s336_s7 = sphi %s355_s7, %s403_s7   ;;  %s332_s6 = sphi %s353_s6, %s402_s6  }
   0x3   : > { %p35_p0 = scmp.ge.s32.totalorder %s33_s10, 2  ;;  %p281_p1 = scmp.ge.s32.totalorder %s340_s8, 2 }
   0x4   : > { %s49_s11 = sand.u32 (!%p281_p1), 1, %s340_s8   ;;  %s283_s12 = sshll.u32 (!%p281_p1), %s336_s7, 2 }
   0x5   : > { %s405_s10 = smov (%p35_p0, %s33_s10), 0  ;;  %47 = sbr.rel (%p281_p1) target bundleno = 12 (0xc), region = 16 }
   0x6   : > { %s282_s13 = sshll.u32 (!%p281_p1), %s49_s11, 2  ;;  %s56_s16 = scalar_lea.vmem (!%p281_p1), %s400_s0, %s283_s12 }
   0x7   : > { %v72_v0 = vld [vmem:[%s56_s16] sm:$0xf] (!%p281_p1)  ;;  %s51_s17 = scalar_lea.vmem (!%p281_p1), [#allocation1], %s282_s13 }
   0x8   : > { %73 = vst [vmem:[%s51_s17] sm:$0xf] (!%p281_p1), %v72_v0 }
   0xc PF: > { %p284_p2 = scmp.ge.s32.totalorder %s340_s8, 1  ;;  %p89_p3 = scmp.lt.s32.totalorder %s340_s8, 3 }
   0xe   : > { %p90_p4 = pnand %p284_p2, %p89_p3 }
  0x10   : > { %93 = sbr.rel (%p90_p4) target bundleno = 656 (0x290), region = 50 }
  0x17   : > { %s380_s18 = sand.u32 1, %s279_s9   ;;  %v111_v1 = vlaneseq  ;;  %v342_v11 = vmov -1.0   ;;  %s288_s22 = sshll.u32 %s332_s6, 2 }
  0x18   : > { %s285_s19 = sshll.u32 %s380_s18, 2  ;;  %s188_s25 = scalar_lea.vmem %s401_s1, %s288_s22 }
  0x19   : > { %s102_s20 = scalar_lea.vmem [#allocation1], %s285_s19  ;;  %v112_v3 = vand.u32 127, %v111_v1  ;;  %v115_v4 = vshrl.u32 %v111_v1, 7  ;;  %s106_s21 = scalar_lea.vmem [#allocation3], %s285_s19 }
  0x1a   : > { %v109_v2 = vld [vmem:[%s102_s20] sm:$0xf] }
  0x1b   : > { %110 = vst [vmem:[#allocation0] sm:$0xf] %v109_v2  ;;  %vm113_vm0 = vcmp.lt.s32.totalorder %v112_v3, 4  ;;  %vm122_vm1 = vcmp.ge.s32.totalorder %v115_v4, %v112_v3  ;;  %vm117_vm2 = vcmp.eq.s32.totalorder %v115_v4, %v112_v3  ;;  %vm136_vm4 = vcmp.eq.s32.totalorder %v112_v3, 0 }
  0x1c   : > { %vm123_vm3 = vmand %vm122_vm1, %vm113_vm0  ;;  %vm133_vm5 = vcmp.eq.s32.totalorder %v112_v3, %v115_v4  ;;  %v137_v12 = vsel %vm136_vm4, 1.0, %v342_v11  ;;  %vm144_vm6 = vcmp.eq.s32.totalorder %v112_v3, 1  ;;  %vm154_vm7 = vcmp.eq.s32.totalorder %v112_v3, 2 }
  0x1d   : > { %v138_v13 = vsel %vm133_vm5, %v137_v12, 0.0  ;;  %vm164_vm8 = vcmp.eq.s32.totalorder %v112_v3, 3 }
  0x22   : > { %v118_v5 = vld [vmem:[#allocation0] sm:$0xff] }
  0x23   : > { %v119_v6 = vsel %vm117_vm2, %v118_v5, 0.0  ;;  %v124_v7 = vsel %vm123_vm3, %v118_v5, 0.0 }
  0x24   : > { %120 = vadd.xlane.f32.xlu0 %v119_v6 }
  0xb1   : > { %v121_v8 = vpop.xlane.xlu0 %120 }
  0xb2   : > { %316 = vrcp.f32 %v121_v8  ;;  %vm171_vm9 = vweird.f32 %v121_v8 }
  0xbc   : > { %v317_v9 = vpop.eup %316 }
  0xbd   : > { %v126_v10 = vmul.f32 %v317_v9, %v124_v7 }
  0xbf   : > { %127 = vst [vmem:[#allocation4] sm:$0xff] %v126_v10 }
  0xc6   : > { %v140_v14 = vld [vmem:[#allocation4 + $0x1] ss:$0 sm:$0xff]  ;;  %v150_v17 = vld [vmem:[#allocation4 + $0x2] ss:$0 sm:$0xff]  ;;  %v160_v22 = vld [vmem:[#allocation4 + $0x3] ss:$0 sm:$0xff] }
  0xc7   : > { %v141_v15 = vxor.u32 2147483648, %v140_v14  ;;  %v151_v19 = vxor.u32 2147483648, %v150_v17  ;;  %v161_v24 = vxor.u32 2147483648, %v160_v22 }
  0xc9   : > { %v145_v16 = vmul.f32 %v141_v15, %v138_v13 }
  0xcb   : > { %146 = vadd.xlane.f32.xlu0 %v145_v16 }
 0x158   : > { %v147_v18 = vpop.xlane.xlu0 %146 }
 0x159   : > { %v148_v20 = vsel %vm144_vm6, %v147_v18, %v138_v13 }
 0x15a   : > { %v155_v21 = vmul.f32 %v151_v19, %v148_v20 }
 0x15c   : > { %156 = vadd.xlane.f32.xlu1 %v155_v21 }
 0x1e9   : > { %v157_v23 = vpop.xlane.xlu1 %156 }
 0x1ea   : > { %v158_v25 = vsel %vm154_vm7, %v157_v23, %v148_v20 }
 0x1eb   : > { %v165_v26 = vmul.f32 %v161_v24, %v158_v25 }
 0x1ed   : > { %166 = vadd.xlane.f32.xlu1 %v165_v26 }
 0x27a   : > { %v167_v27 = vpop.xlane.xlu1 %166 }
 0x27b   : > { %v168_v28 = vsel %vm164_vm8, %v167_v27, %v158_v25 }
 0x27c   : > { %v170_v29 = vmul.f32 %v317_v9, %v168_v28 }
 0x27e   : > { %v172_v30 = vsel %vm171_vm9, %v168_v28, %v170_v29 }
 0x27f   : > { %173 = vst [vmem:[#allocation2] sm:$0xff] %v172_v30 }
 0x286   : > { %v177_v31 = vld [vmem:[#allocation2] sm:$0xf] }
 0x287   : > { %179 = vst [vmem:[%s106_s21] sm:$0xf] %v177_v31 }
 0x28e   : > { %v204_v32 = vld [vmem:[%s106_s21] sm:$0xf] }
 0x28f   : > { %205 = vst [vmem:[%s188_s25] sm:$0xf] %v204_v32 }
 0x290 PF: > { %s7_s8 = sadd.s32 1, %s340_s8   ;;  %s402_s6 = smov %s336_s7 }
 0x291   : > { %p4_p5 = scmp.ge.s32.totalorder %s7_s8, 4   ;;  %s403_s7 = smov %s405_s10 }
 0x293   :  { %6 = sbr.rel (!%p4_p5) target bundleno = 2 (0x2), region = 113 }

// kernel: custom-call.32
= control target key start
LH: loop header
LB: loop body
LE: loop exit
PB: predicated region body
PF: predicated region fallthrough
CT: control target
= control target key end

     0   :  { %s352_s6 = smov 0   ;;  %s354_s7 = smov 0   ;;  %s399_s0 = inlined_call_operand.vmem [shape: f32[2,1,4,4], index: 0, kind: input, shape index: {}]   ;;  %s400_s1 = inlined_call_operand.vmem [shape: f32[2,1,4,4], index: 1, kind: output, shape index: {}]  }
   0x1   :  { %s356_s8 = smov 0  }
   0x2 LB: > { %s278_s9 = sadd.s32 4294967295, %s339_s8   ;;  %s33_s10 = sadd.s32 1, %s335_s7  ;;  %s339_s8 = sphi %s356_s8, %s7_s8   ;;  %s335_s7 = sphi %s354_s7, %s402_s7   ;;  %s331_s6 = sphi %s352_s6, %s401_s6  }
   0x3   : > { %p35_p0 = scmp.ge.s32.totalorder %s33_s10, 2  ;;  %p280_p1 = scmp.ge.s32.totalorder %s339_s8, 2 }
   0x4   : > { %s49_s11 = sand.u32 (!%p280_p1), 1, %s339_s8   ;;  %s282_s12 = sshll.u32 (!%p280_p1), %s335_s7, 2 }
   0x5   : > { %s404_s10 = smov (%p35_p0, %s33_s10), 0  ;;  %47 = sbr.rel (%p280_p1) target bundleno = 12 (0xc), region = 16 }
   0x6   : > { %s281_s13 = sshll.u32 (!%p280_p1), %s49_s11, 2  ;;  %s56_s16 = scalar_lea.vmem (!%p280_p1), %s399_s0, %s282_s12 }
   0x7   : > { %v72_v0 = vld [vmem:[%s56_s16] sm:$0xf] (!%p280_p1)  ;;  %s51_s17 = scalar_lea.vmem (!%p280_p1), [#allocation1], %s281_s13 }
   0x8   : > { %73 = vst [vmem:[%s51_s17] sm:$0xf] (!%p280_p1), %v72_v0 }
   0xc PF: > { %p283_p2 = scmp.ge.s32.totalorder %s339_s8, 1  ;;  %p89_p3 = scmp.lt.s32.totalorder %s339_s8, 3 }
   0xe   : > { %p90_p4 = pnand %p283_p2, %p89_p3 }
  0x10   : > { %93 = sbr.rel (%p90_p4) target bundleno = 656 (0x290), region = 50 }
  0x17   : > { %s379_s18 = sand.u32 1, %s278_s9   ;;  %v111_v1 = vlaneseq  ;;  %v341_v11 = vmov -1.0   ;;  %s287_s22 = sshll.u32 %s331_s6, 2 }
  0x18   : > { %s284_s19 = sshll.u32 %s379_s18, 2  ;;  %s187_s25 = scalar_lea.vmem %s400_s1, %s287_s22 }
  0x19   : > { %s102_s20 = scalar_lea.vmem [#allocation1], %s284_s19  ;;  %v112_v3 = vand.u32 127, %v111_v1  ;;  %v115_v4 = vshrl.u32 %v111_v1, 7  ;;  %s106_s21 = scalar_lea.vmem [#allocation3], %s284_s19 }
  0x1a   : > { %v109_v2 = vld [vmem:[%s102_s20] sm:$0xf] }
  0x1b   : > { %110 = vst [vmem:[#allocation0] sm:$0xf] %v109_v2  ;;  %vm113_vm0 = vcmp.lt.s32.totalorder %v112_v3, 4  ;;  %vm122_vm1 = vcmp.le.s32.totalorder %v115_v4, %v112_v3  ;;  %vm117_vm2 = vcmp.eq.s32.totalorder %v115_v4, %v112_v3  ;;  %vm136_vm4 = vcmp.eq.s32.totalorder %v112_v3, 3 }
  0x1c   : > { %vm123_vm3 = vmand %vm122_vm1, %vm113_vm0  ;;  %vm133_vm5 = vcmp.eq.s32.totalorder %v112_v3, %v115_v4  ;;  %v137_v12 = vsel %vm136_vm4, 1.0, %v341_v11  ;;  %vm144_vm6 = vcmp.eq.s32.totalorder %v112_v3, 2  ;;  %vm154_vm7 = vcmp.eq.s32.totalorder %v112_v3, 1 }
  0x1d   : > { %v138_v13 = vsel %vm133_vm5, %v137_v12, 0.0  ;;  %vm163_vm8 = vcmp.eq.s32.totalorder %v112_v3, 0 }
  0x22   : > { %v118_v5 = vld [vmem:[#allocation0] sm:$0xff] }
  0x23   : > { %v119_v6 = vsel %vm117_vm2, %v118_v5, 0.0  ;;  %v124_v7 = vsel %vm123_vm3, %v118_v5, 0.0 }
  0x24   : > { %120 = vadd.xlane.f32.xlu0 %v119_v6 }
  0xb1   : > { %v121_v8 = vpop.xlane.xlu0 %120 }
  0xb2   : > { %315 = vrcp.f32 %v121_v8  ;;  %vm170_vm9 = vweird.f32 %v121_v8 }
  0xbc   : > { %v316_v9 = vpop.eup %315 }
  0xbd   : > { %v126_v10 = vmul.f32 %v316_v9, %v124_v7 }
  0xbf   : > { %127 = vst [vmem:[#allocation4] sm:$0xff] %v126_v10 }
  0xc6   : > { %v140_v14 = vld [vmem:[#allocation4 + $0x2] ss:$0 sm:$0xff]  ;;  %v150_v17 = vld [vmem:[#allocation4 + $0x1] ss:$0 sm:$0xff]  ;;  %v159_v22 = vld [vmem:[#allocation4] ss:$0 sm:$0xff] }
  0xc7   : > { %v141_v15 = vxor.u32 2147483648, %v140_v14  ;;  %v151_v19 = vxor.u32 2147483648, %v150_v17  ;;  %v160_v24 = vxor.u32 2147483648, %v159_v22 }
  0xc9   : > { %v145_v16 = vmul.f32 %v141_v15, %v138_v13 }
  0xcb   : > { %146 = vadd.xlane.f32.xlu0 %v145_v16 }
 0x158   : > { %v147_v18 = vpop.xlane.xlu0 %146 }
 0x159   : > { %v148_v20 = vsel %vm144_vm6, %v147_v18, %v138_v13 }
 0x15a   : > { %v155_v21 = vmul.f32 %v151_v19, %v148_v20 }
 0x15c   : > { %156 = vadd.xlane.f32.xlu1 %v155_v21 }
 0x1e9   : > { %v157_v23 = vpop.xlane.xlu1 %156 }
 0x1ea   : > { %v158_v25 = vsel %vm154_vm7, %v157_v23, %v148_v20 }
 0x1eb   : > { %v164_v26 = vmul.f32 %v160_v24, %v158_v25 }
 0x1ed   : > { %165 = vadd.xlane.f32.xlu1 %v164_v26 }
 0x27a   : > { %v166_v27 = vpop.xlane.xlu1 %165 }
 0x27b   : > { %v167_v28 = vsel %vm163_vm8, %v166_v27, %v158_v25 }
 0x27c   : > { %v169_v29 = vmul.f32 %v316_v9, %v167_v28 }
 0x27e   : > { %v171_v30 = vsel %vm170_vm9, %v167_v28, %v169_v29 }
 0x27f   : > { %172 = vst [vmem:[#allocation2] sm:$0xff] %v171_v30 }
 0x286   : > { %v176_v31 = vld [vmem:[#allocation2] sm:$0xf] }
 0x287   : > { %178 = vst [vmem:[%s106_s21] sm:$0xf] %v176_v31 }
 0x28e   : > { %v203_v32 = vld [vmem:[%s106_s21] sm:$0xf] }
 0x28f   : > { %204 = vst [vmem:[%s187_s25] sm:$0xf] %v203_v32 }
 0x290 PF: > { %s7_s8 = sadd.s32 1, %s339_s8   ;;  %s401_s6 = smov %s335_s7 }
 0x291   : > { %p4_p5 = scmp.ge.s32.totalorder %s7_s8, 4   ;;  %s402_s7 = smov %s404_s10 }
 0x293   :  { %6 = sbr.rel (!%p4_p5) target bundleno = 2 (0x2), region = 112 }

// kernel: mul.98
= control target key start
LH: loop header
LB: loop body
LE: loop exit
PB: predicated region body
PF: predicated region fallthrough
CT: control target
= control target key end

     0   :  { %2 = vsyncpa [#allocation1], 0  ;;  %s775_s6 = smov [#allocation0]   ;;  %s1065_s0 = inlined_call_operand.hbm [shape: f32[2,8,16,16], index: 0, kind: input, shape index: {}]   ;;  %s1066_s1 = inlined_call_operand.vmem [shape: f32[2,8,256], index: 1, kind: output, shape index: {}]  }
   0x1   :  { %s7_s7 = sshll.u32 %s775_s6, 4  ;;  %s751_s10 = scalar_lea.hbm %s1065_s0, 4096  ;;  %s8_s7 = int_to_ptr.vmem [resolvable:$true] %s7_s7 }
   0x2   :  { %p752_p0 = scmp.ne.s32.totalorder %s1065_s0, %s751_s10  ;;  %p755_p1 = scmp.lt.u32.totalorder %s751_s10, %s1065_s0 }
   0x4   :  { %p757_p2 = pnand %p755_p1, %p752_p0 }
   0x6   :  { %760 = shalt.err (!%p757_p2)
}
   0x7   :  { %s761_s15 = scalar_lea.vmem %s8_s7, 4096  ;;  %p766_p4 = scmp.lt.s32.totalorder %s8_s7, %s8_s7 }
   0x8   :  { %p762_p3 = scmp.ne.s32.totalorder %s8_s7, %s761_s15  ;;  %p767_p5 = scmp.lt.s32.totalorder %s761_s15, %s761_s15 }
   0xa   :  { %p768_p6 = por %p767_p5, %p766_p4 }
   0xc   :  { %p769_p7 = pnand %p768_p6, %p762_p3 }
   0xe   :  { %772 = shalt.err (!%p769_p7)
}
   0xf   :  { %10 = dma.hbm_to_vmem [thread:$0]  %s1065_s0, 4096, %s8_s7, [#allocation1]  }
  0x10   :  { %773 = dma.done.wait [#allocation1], 4096  }
  0x11   :  { %774 = vsyncadd [#allocation1], 4294963200  ;;  %s115_s0 = smov 3  ;;  %s118_s18 = smov 12  ;;  %vm75_vm0 = vcmask 1043458   ;;  %vm80_vm1 = vcmask 1045508  }
  0x12   :  { %s123_s19 = smov 48  ;;  %s128_s20 = smov 192  ;;  %vm85_vm2 = vcmask 1047558   ;;  %v116_v0 = vld [vmem:[#allocation0 + $0x87] ss:$16 sm:%s115_s0]   ;;  %vm14_vm3 = vcmask 1047556  }
  0x13   :  { %s70_s21 = smov 3  ;;  %s73_s22 = smov 12  ;;  %v119_v1 = vld [vmem:[#allocation0 + $0x87] ss:$16 sm:%s118_s18]   ;;  %vm16_vm4 = vcmask 130048   ;;  %vm89_vm5 = vcmask 1048448  }
  0x14   :  { %s78_s23 = smov 48  ;;  %s83_s24 = smov 192  ;;  %v124_v2 = vld [vmem:[#allocation0 + $0x87] ss:$16 sm:%s123_s19]   ;;  %v121_v3 = vsel %vm75_vm0, %v119_v1, %v116_v0  ;;  %vm180_vm6 = vcmask 917248   ;;  %vm271_vm7 = vcmask 786048  }
  0x15   :  { %s138_s25 = smov 3  ;;  %s141_s26 = smov 12  ;;  %v129_v4 = vld [vmem:[#allocation0 + $0x87] ss:$16 sm:%s128_s20]   ;;  %v126_v7 = vsel %vm80_vm1, %v124_v2, %v121_v3  ;;  %vm362_vm8 = vcmask 654848   ;;  %vm453_vm9 = vcmask 523648  }
  0x16   :  { %s146_s27 = smov 48  ;;  %s151_s28 = smov 192  ;;  %v71_v5 = vld [vmem:[#allocation0 + $0x7] ss:$16 sm:%s70_s21]   ;;  %v139_v11 = vld [vmem:[#allocation0 + $0x8f] ss:$16 sm:%s138_s25]   ;;  %v131_v12 = vsel %vm85_vm2, %v129_v4, %v126_v7 }
  0x17   :  { %v74_v6 = vld [vmem:[#allocation0 + $0x7] ss:$16 sm:%s73_s22]   ;;  %v142_v14 = vld [vmem:[#allocation0 + $0x8f] ss:$16 sm:%s141_s26]   ;;  %s776_s29 = smov 112   ;;  %s92_s30 = smov 3 }
  0x18   :  { %v76_v8 = vsel %vm75_vm0, %v74_v6, %v71_v5  ;;  %v79_v9 = vld [vmem:[#allocation0 + $0x7] ss:$16 sm:%s78_s23]   ;;  %v147_v15 = vld [vmem:[#allocation0 + $0x8f] ss:$16 sm:%s146_s27]   ;;  %132 = vrot.lane.b32.xlu1 %v131_v12, %s776_s29  ;;  %v144_v18 = vsel %vm75_vm0, %v142_v14, %v139_v11  ;;  %s95_s2 = smov 12  ;;  %s100_s3 = smov 48 }
  0x19   :  { %v84_v10 = vld [vmem:[#allocation0 + $0x7] ss:$16 sm:%s83_s24]   ;;  %v81_v13 = vsel %vm80_vm1, %v79_v9, %v76_v8  ;;  %v152_v16 = vld [vmem:[#allocation0 + $0x8f] ss:$16 sm:%s151_s28]   ;;  %v149_v19 = vsel %vm80_vm1, %v147_v15, %v144_v18  ;;  %s105_s4 = smov 192  ;;  %s183_s5 = smov 3 }
  0x1a   :  { %v86_v17 = vsel %vm85_vm2, %v84_v10, %v81_v13  ;;  %v93_v20 = vld [vmem:[#allocation0 + $0xf] ss:$16 sm:%s92_s30]   ;;  %v154_v22 = vsel %vm85_vm2, %v152_v16, %v149_v19  ;;  %v184_v27 = vld [vmem:[#allocation0 + $0xe] ss:$16 sm:%s183_s5]   ;;  %s186_s6 = smov 12  ;;  %s191_s7 = smov 48 }
  0x1b   :  { %87 = vrot.lane.b32.xlu0 %v86_v17, %s776_s29  ;;  %v96_v21 = vld [vmem:[#allocation0 + $0xf] ss:$16 sm:%s95_s2]   ;;  %v187_v29 = vld [vmem:[#allocation0 + $0xe] ss:$16 sm:%s186_s6]   ;;  %s196_s8 = smov 192  ;;  %s161_s9 = smov 3 }
  0x1c   :  { %v98_v23 = vsel %vm75_vm0, %v96_v21, %v93_v20  ;;  %v101_v24 = vld [vmem:[#allocation0 + $0xf] ss:$16 sm:%s100_s3]   ;;  %155 = vrot.lane.b32.xlu1 %v154_v22, %s776_s29  ;;  %v192_v30 = vld [vmem:[#allocation0 + $0xe] ss:$16 sm:%s191_s7]   ;;  %v189_v31 = vsel %vm75_vm0, %v187_v29, %v184_v27  ;;  %v162_v33 = vld [vmem:[#allocation0 + $0x6] ss:$16 sm:%s161_s9]  }
  0x1d   :  { %v106_v25 = vld [vmem:[#allocation0 + $0xf] ss:$16 sm:%s105_s4]   ;;  %v103_v26 = vsel %vm80_vm1, %v101_v24, %v98_v23  ;;  %v197_v32 = vld [vmem:[#allocation0 + $0xe] ss:$16 sm:%s196_s8]   ;;  %s164_s10 = smov 12  ;;  %s169_s11 = smov 48  ;;  %v194_v34 = vsel %vm80_vm1, %v192_v30, %v189_v31 }
  0x1e   :  { %v108_v28 = vsel %vm85_vm2, %v106_v25, %v103_v26  ;;  %v165_v35 = vld [vmem:[#allocation0 + $0x6] ss:$16 sm:%s164_s10]   ;;  %s174_s12 = smov 192  ;;  %s229_s13 = smov 3  ;;  %v199_v37 = vsel %vm85_vm2, %v197_v32, %v194_v34  ;;  %vm544_vm10 = vcmask 392448   ;;  %vm635_vm11 = vcmask 261248  }
  0x1f   :  { %109 = vrot.lane.b32.xlu0 %v108_v28, %s776_s29  ;;  %v170_v36 = vld [vmem:[#allocation0 + $0x6] ss:$16 sm:%s169_s11]   ;;  %v167_v38 = vsel %vm75_vm0, %v165_v35, %v162_v33  ;;  %v230_v40 = vld [vmem:[#allocation0 + $0x8e] ss:$16 sm:%s229_s13]   ;;  %s232_s14 = smov 12  ;;  %s237_s15 = smov 48 }
  0x20   :  { %v175_v39 = vld [vmem:[#allocation0 + $0x6] ss:$16 sm:%s174_s12]   ;;  %s777_s16 = smov 96   ;;  %v172_v41 = vsel %vm80_vm1, %v170_v36, %v167_v38  ;;  %v233_v42 = vld [vmem:[#allocation0 + $0x8e] ss:$16 sm:%s232_s14]   ;;  %s242_s17 = smov 192 }
  0x21   :  { %200 = vrot.lane.b32.xlu1 %v199_v37, %s777_s16  ;;  %v238_v43 = vld [vmem:[#allocation0 + $0x8e] ss:$16 sm:%s237_s15]   ;;  %s206_s0 = smov 3  ;;  %v177_v44 = vsel %vm85_vm2, %v175_v39, %v172_v41  ;;  %v235_v45 = vsel %vm75_vm0, %v233_v42, %v230_v40  ;;  %s209_s18 = smov 12 }
  0x22   :  { %v243_v46 = vld [vmem:[#allocation0 + $0x8e] ss:$16 sm:%s242_s17]   ;;  %v207_v47 = vld [vmem:[#allocation0 + $0x86] ss:$16 sm:%s206_s0]   ;;  %s214_s19 = smov 48  ;;  %v240_v48 = vsel %vm80_vm1, %v238_v43, %v235_v45  ;;  %s219_s20 = smov 192 }
  0x23   :  { %178 = vrot.lane.b32.xlu0 %v177_v44, %s777_s16  ;;  %v210_v49 = vld [vmem:[#allocation0 + $0x86] ss:$16 sm:%s209_s18]   ;;  %v245_v51 = vsel %vm85_vm2, %v243_v46, %v240_v48  ;;  %s274_s21 = smov 3  ;;  %s277_s22 = smov 12 }
  0x24   :  { %v215_v50 = vld [vmem:[#allocation0 + $0x86] ss:$16 sm:%s214_s19]   ;;  %v212_v52 = vsel %vm75_vm0, %v210_v49, %v207_v47  ;;  %v275_v55 = vld [vmem:[#allocation0 + $0xd] ss:$16 sm:%s274_s21]   ;;  %s282_s23 = smov 48  ;;  %s287_s24 = smov 192 }
  0x25   :  { %v220_v53 = vld [vmem:[#allocation0 + $0x86] ss:$16 sm:%s219_s20]   ;;  %246 = vrot.lane.b32.xlu1 %v245_v51, %s777_s16  ;;  %v217_v54 = vsel %vm80_vm1, %v215_v50, %v212_v52  ;;  %v278_v56 = vld [vmem:[#allocation0 + $0xd] ss:$16 sm:%s277_s22]   ;;  %s252_s25 = smov 3  ;;  %s255_s26 = smov 12 }
  0x26   :  { %v222_v57 = vsel %vm85_vm2, %v220_v53, %v217_v54  ;;  %v280_v58 = vsel %vm75_vm0, %v278_v56, %v275_v55  ;;  %v283_v59 = vld [vmem:[#allocation0 + $0xd] ss:$16 sm:%s282_s23]   ;;  %v253_v62 = vld [vmem:[#allocation0 + $0x5] ss:$16 sm:%s252_s25]   ;;  %s260_s27 = smov 48  ;;  %s265_s28 = smov 192 }
  0x27   :  { %v288_v60 = vld [vmem:[#allocation0 + $0xd] ss:$16 sm:%s287_s24]   ;;  %223 = vrot.lane.b32.xlu0 %v222_v57, %s777_s16  ;;  %v285_v61 = vsel %vm80_vm1, %v283_v59, %v280_v58  ;;  %v256_v63 = vld [vmem:[#allocation0 + $0x5] ss:$16 sm:%s255_s26]   ;;  %s320_s29 = smov 3  ;;  %s323_s30 = smov 12 }
  0x28   :  { %v290_v0 = vsel %vm85_vm2, %v288_v60, %v285_v61  ;;  %v258_v1 = vsel %vm75_vm0, %v256_v63, %v253_v62  ;;  %v261_v2 = vld [vmem:[#allocation0 + $0x5] ss:$16 sm:%s260_s27]   ;;  %s778_s2 = smov 80   ;;  %v321_v5 = vld [vmem:[#allocation0 + $0x8d] ss:$16 sm:%s320_s29]   ;;  %s328_s3 = smov 48 }
  0x29   :  { %v266_v3 = vld [vmem:[#allocation0 + $0x5] ss:$16 sm:%s265_s28]   ;;  %291 = vrot.lane.b32.xlu1 %v290_v0, %s778_s2  ;;  %v263_v4 = vsel %vm80_vm1, %v261_v2, %v258_v1  ;;  %v324_v6 = vld [vmem:[#allocation0 + $0x8d] ss:$16 sm:%s323_s30]   ;;  %s333_s4 = smov 192  ;;  %s297_s5 = smov 3 }
  0x2a   :  { %v268_v7 = vsel %vm85_vm2, %v266_v3, %v263_v4  ;;  %v326_v8 = vsel %vm75_vm0, %v324_v6, %v321_v5  ;;  %v329_v9 = vld [vmem:[#allocation0 + $0x8d] ss:$16 sm:%s328_s3]   ;;  %s300_s6 = smov 12  ;;  %v298_v12 = vld [vmem:[#allocation0 + $0x85] ss:$16 sm:%s297_s5]   ;;  %s305_s7 = smov 48 }
  0x2b   :  { %v334_v10 = vld [vmem:[#allocation0 + $0x8d] ss:$16 sm:%s333_s4]   ;;  %269 = vrot.lane.b32.xlu0 %v268_v7, %s778_s2  ;;  %v331_v11 = vsel %vm80_vm1, %v329_v9, %v326_v8  ;;  %v301_v13 = vld [vmem:[#allocation0 + $0x85] ss:$16 sm:%s300_s6]   ;;  %s310_s8 = smov 192  ;;  %s365_s9 = smov 3 }
  0x2c   :  { %v336_v14 = vsel %vm85_vm2, %v334_v10, %v331_v11  ;;  %v303_v15 = vsel %vm75_vm0, %v301_v13, %v298_v12  ;;  %v306_v16 = vld [vmem:[#allocation0 + $0x85] ss:$16 sm:%s305_s7]   ;;  %v366_v19 = vld [vmem:[#allocation0 + $0xc] ss:$16 sm:%s365_s9]   ;;  %s368_s10 = smov 12  ;;  %s373_s11 = smov 48 }
  0x2d   :  { %v311_v17 = vld [vmem:[#allocation0 + $0x85] ss:$16 sm:%s310_s8]   ;;  %337 = vrot.lane.b32.xlu1 %v336_v14, %s778_s2  ;;  %v308_v18 = vsel %vm80_vm1, %v306_v16, %v303_v15  ;;  %v369_v21 = vld [vmem:[#allocation0 + $0xc] ss:$16 sm:%s368_s10]   ;;  %s378_s12 = smov 192  ;;  %s343_s13 = smov 3 }
  0x2e   :  { %v313_v20 = vsel %vm85_vm2, %v311_v17, %v308_v18  ;;  %v374_v22 = vld [vmem:[#allocation0 + $0xc] ss:$16 sm:%s373_s11]   ;;  %v371_v23 = vsel %vm75_vm0, %v369_v21, %v366_v19  ;;  %v344_v25 = vld [vmem:[#allocation0 + $0x4] ss:$16 sm:%s343_s13]   ;;  %s346_s14 = smov 12  ;;  %s351_s15 = smov 48 }
  0x2f   :  { %314 = vrot.lane.b32.xlu0 %v313_v20, %s778_s2  ;;  %v379_v24 = vld [vmem:[#allocation0 + $0xc] ss:$16 sm:%s378_s12]   ;;  %v376_v26 = vsel %vm80_vm1, %v374_v22, %v371_v23  ;;  %v347_v27 = vld [vmem:[#allocation0 + $0x4] ss:$16 sm:%s346_s14]   ;;  %s356_s16 = smov 192  ;;  %s411_s17 = smov 3 }
  0x30   :  { %v352_v28 = vld [vmem:[#allocation0 + $0x4] ss:$16 sm:%s351_s15]   ;;  %v381_v29 = vsel %vm85_vm2, %v379_v24, %v376_v26  ;;  %v349_v30 = vsel %vm75_vm0, %v347_v27, %v344_v25  ;;  %v412_v32 = vld [vmem:[#allocation0 + $0x8c] ss:$16 sm:%s411_s17]   ;;  %s414_s0 = smov 12  ;;  %s419_s18 = smov 48 }
  0x31   :  { %v357_v31 = vld [vmem:[#allocation0 + $0x4] ss:$16 sm:%s356_s16]   ;;  %s779_s19 = smov 64   ;;  %v354_v33 = vsel %vm80_vm1, %v352_v28, %v349_v30  ;;  %v415_v34 = vld [vmem:[#allocation0 + $0x8c] ss:$16 sm:%s414_s0]   ;;  %s424_s20 = smov 192 }
  0x32   :  { %382 = vrot.lane.b32.xlu1 %v381_v29, %s779_s19  ;;  %v420_v35 = vld [vmem:[#allocation0 + $0x8c] ss:$16 sm:%s419_s18]   ;;  %s388_s21 = smov 3  ;;  %v359_v36 = vsel %vm85_vm2, %v357_v31, %v354_v33  ;;  %v417_v37 = vsel %vm75_vm0, %v415_v34, %v412_v32  ;;  %s391_s22 = smov 12 }
  0x33   :  { %v425_v38 = vld [vmem:[#allocation0 + $0x8c] ss:$16 sm:%s424_s20]   ;;  %v389_v39 = vld [vmem:[#allocation0 + $0x84] ss:$16 sm:%s388_s21]   ;;  %s396_s23 = smov 48  ;;  %360 = vrot.lane.b32.xlu0 %v359_v36, %s779_s19  ;;  %v422_v40 = vsel %vm80_vm1, %v420_v35, %v417_v37  ;;  %s401_s24 = smov 192 }
  0x34   :  { %v392_v41 = vld [vmem:[#allocation0 + $0x84] ss:$16 sm:%s391_s22]   ;;  %v427_v43 = vsel %vm85_vm2, %v425_v38, %v422_v40  ;;  %s456_s25 = smov 3  ;;  %s459_s26 = smov 12 }
  0x35   :  { %v397_v42 = vld [vmem:[#allocation0 + $0x84] ss:$16 sm:%s396_s23]   ;;  %v394_v44 = vsel %vm75_vm0, %v392_v41, %v389_v39  ;;  %v457_v47 = vld [vmem:[#allocation0 + $0xb] ss:$16 sm:%s456_s25]   ;;  %s464_s27 = smov 48  ;;  %s469_s28 = smov 192 }
  0x36   :  { %v402_v45 = vld [vmem:[#allocation0 + $0x84] ss:$16 sm:%s401_s24]   ;;  %428 = vrot.lane.b32.xlu1 %v427_v43, %s779_s19  ;;  %v399_v46 = vsel %vm80_vm1, %v397_v42, %v394_v44  ;;  %v460_v48 = vld [vmem:[#allocation0 + $0xb] ss:$16 sm:%s459_s26]   ;;  %s434_s29 = smov 3  ;;  %s437_s30 = smov 12 }
  0x37   :  { %v404_v49 = vsel %vm85_vm2, %v402_v45, %v399_v46  ;;  %v462_v50 = vsel %vm75_vm0, %v460_v48, %v457_v47  ;;  %v465_v51 = vld [vmem:[#allocation0 + $0xb] ss:$16 sm:%s464_s27]   ;;  %v435_v54 = vld [vmem:[#allocation0 + $0x3] ss:$16 sm:%s434_s29]   ;;  %s442_s2 = smov 48  ;;  %s447_s3 = smov 192 }
  0x38   :  { %v470_v52 = vld [vmem:[#allocation0 + $0xb] ss:$16 sm:%s469_s28]   ;;  %405 = vrot.lane.b32.xlu0 %v404_v49, %s779_s19  ;;  %v467_v53 = vsel %vm80_vm1, %v465_v51, %v462_v50  ;;  %v438_v55 = vld [vmem:[#allocation0 + $0x3] ss:$16 sm:%s437_s30]   ;;  %s502_s4 = smov 3  ;;  %s505_s5 = smov 12 }
  0x39   :  { %v472_v56 = vsel %vm85_vm2, %v470_v52, %v467_v53  ;;  %v440_v57 = vsel %vm75_vm0, %v438_v55, %v435_v54  ;;  %v443_v58 = vld [vmem:[#allocation0 + $0x3] ss:$16 sm:%s442_s2]   ;;  %s780_s6 = smov 48   ;;  %v503_v61 = vld [vmem:[#allocation0 + $0x8b] ss:$16 sm:%s502_s4]   ;;  %s510_s7 = smov 48 }
  0x3a   :  { %v448_v59 = vld [vmem:[#allocation0 + $0x3] ss:$16 sm:%s447_s3]   ;;  %473 = vrot.lane.b32.xlu1 %v472_v56, %s780_s6  ;;  %v445_v60 = vsel %vm80_vm1, %v443_v58, %v440_v57  ;;  %v506_v62 = vld [vmem:[#allocation0 + $0x8b] ss:$16 sm:%s505_s5]   ;;  %s515_s8 = smov 192  ;;  %s479_s9 = smov 3 }
  0x3b   :  { %v450_v63 = vsel %vm85_vm2, %v448_v59, %v445_v60  ;;  %v508_v0 = vsel %vm75_vm0, %v506_v62, %v503_v61  ;;  %v511_v1 = vld [vmem:[#allocation0 + $0x8b] ss:$16 sm:%s510_s7]   ;;  %s482_s10 = smov 12  ;;  %v480_v4 = vld [vmem:[#allocation0 + $0x83] ss:$16 sm:%s479_s9]   ;;  %s487_s11 = smov 48 }
  0x3c   :  { %v516_v2 = vld [vmem:[#allocation0 + $0x8b] ss:$16 sm:%s515_s8]   ;;  %451 = vrot.lane.b32.xlu0 %v450_v63, %s780_s6  ;;  %v513_v3 = vsel %vm80_vm1, %v511_v1, %v508_v0  ;;  %v483_v5 = vld [vmem:[#allocation0 + $0x83] ss:$16 sm:%s482_s10]   ;;  %s492_s12 = smov 192  ;;  %s547_s13 = smov 3 }
  0x3d   :  { %v518_v6 = vsel %vm85_vm2, %v516_v2, %v513_v3  ;;  %v485_v7 = vsel %vm75_vm0, %v483_v5, %v480_v4  ;;  %v488_v8 = vld [vmem:[#allocation0 + $0x83] ss:$16 sm:%s487_s11]   ;;  %v548_v11 = vld [vmem:[#allocation0 + $0xa] ss:$16 sm:%s547_s13]   ;;  %s550_s14 = smov 12  ;;  %s555_s15 = smov 48 }
  0x3e   :  { %v493_v9 = vld [vmem:[#allocation0 + $0x83] ss:$16 sm:%s492_s12]   ;;  %519 = vrot.lane.b32.xlu1 %v518_v6, %s780_s6  ;;  %v490_v10 = vsel %vm80_vm1, %v488_v8, %v485_v7  ;;  %v551_v13 = vld [vmem:[#allocation0 + $0xa] ss:$16 sm:%s550_s14]   ;;  %s560_s16 = smov 192  ;;  %s525_s17 = smov 3 }
  0x3f   :  { %v495_v12 = vsel %vm85_vm2, %v493_v9, %v490_v10  ;;  %v556_v14 = vld [vmem:[#allocation0 + $0xa] ss:$16 sm:%s555_s15]   ;;  %v553_v15 = vsel %vm75_vm0, %v551_v13, %v548_v11  ;;  %v526_v17 = vld [vmem:[#allocation0 + $0x2] ss:$16 sm:%s525_s17]   ;;  %s528_s0 = smov 12  ;;  %s533_s18 = smov 48 }
  0x40   :  { %496 = vrot.lane.b32.xlu0 %v495_v12, %s780_s6  ;;  %v561_v16 = vld [vmem:[#allocation0 + $0xa] ss:$16 sm:%s560_s16]   ;;  %v558_v18 = vsel %vm80_vm1, %v556_v14, %v553_v15  ;;  %v529_v19 = vld [vmem:[#allocation0 + $0x2] ss:$16 sm:%s528_s0]   ;;  %s538_s19 = smov 192  ;;  %s593_s20 = smov 3 }
  0x41   :  { %v534_v20 = vld [vmem:[#allocation0 + $0x2] ss:$16 sm:%s533_s18]   ;;  %v563_v21 = vsel %vm85_vm2, %v561_v16, %v558_v18  ;;  %v531_v22 = vsel %vm75_vm0, %v529_v19, %v526_v17  ;;  %v594_v24 = vld [vmem:[#allocation0 + $0x8a] ss:$16 sm:%s593_s20]   ;;  %s596_s21 = smov 12  ;;  %s601_s22 = smov 48 }
  0x42   :  { %v539_v23 = vld [vmem:[#allocation0 + $0x2] ss:$16 sm:%s538_s19]   ;;  %s781_s23 = smov 32   ;;  %v536_v25 = vsel %vm80_vm1, %v534_v20, %v531_v22  ;;  %v597_v26 = vld [vmem:[#allocation0 + $0x8a] ss:$16 sm:%s596_s21]   ;;  %s606_s24 = smov 192 }
  0x43   :  { %564 = vrot.lane.b32.xlu1 %v563_v21, %s781_s23  ;;  %v602_v27 = vld [vmem:[#allocation0 + $0x8a] ss:$16 sm:%s601_s22]   ;;  %s570_s25 = smov 3  ;;  %v541_v28 = vsel %vm85_vm2, %v539_v23, %v536_v25  ;;  %v599_v29 = vsel %vm75_vm0, %v597_v26, %v594_v24  ;;  %s573_s26 = smov 12 }
  0x44   :  { %v607_v30 = vld [vmem:[#allocation0 + $0x8a] ss:$16 sm:%s606_s24]   ;;  %v571_v31 = vld [vmem:[#allocation0 + $0x82] ss:$16 sm:%s570_s25]   ;;  %s578_s27 = smov 48  ;;  %542 = vrot.lane.b32.xlu0 %v541_v28, %s781_s23  ;;  %v604_v32 = vsel %vm80_vm1, %v602_v27, %v599_v29  ;;  %s583_s28 = smov 192 }
  0x45   :  { %v574_v33 = vld [vmem:[#allocation0 + $0x82] ss:$16 sm:%s573_s26]   ;;  %v609_v35 = vsel %vm85_vm2, %v607_v30, %v604_v32  ;;  %s638_s29 = smov 3  ;;  %s641_s30 = smov 12 }
  0x46   :  { %v579_v34 = vld [vmem:[#allocation0 + $0x82] ss:$16 sm:%s578_s27]   ;;  %v576_v36 = vsel %vm75_vm0, %v574_v33, %v571_v31  ;;  %v639_v39 = vld [vmem:[#allocation0 + $0x9] ss:$16 sm:%s638_s29]   ;;  %s646_s2 = smov 48  ;;  %s651_s3 = smov 192 }
  0x47   :  { %v584_v37 = vld [vmem:[#allocation0 + $0x82] ss:$16 sm:%s583_s28]   ;;  %610 = vrot.lane.b32.xlu1 %v609_v35, %s781_s23  ;;  %v581_v38 = vsel %vm80_vm1, %v579_v34, %v576_v36  ;;  %v642_v40 = vld [vmem:[#allocation0 + $0x9] ss:$16 sm:%s641_s30]   ;;  %s616_s4 = smov 3  ;;  %s619_s5 = smov 12 }
  0x48   :  { %v586_v41 = vsel %vm85_vm2, %v584_v37, %v581_v38  ;;  %v644_v42 = vsel %vm75_vm0, %v642_v40, %v639_v39  ;;  %v647_v43 = vld [vmem:[#allocation0 + $0x9] ss:$16 sm:%s646_s2]   ;;  %v617_v46 = vld [vmem:[#allocation0 + $0x1] ss:$16 sm:%s616_s4]   ;;  %s624_s6 = smov 48  ;;  %s629_s7 = smov 192 }
  0x49   :  { %v652_v44 = vld [vmem:[#allocation0 + $0x9] ss:$16 sm:%s651_s3]   ;;  %587 = vrot.lane.b32.xlu0 %v586_v41, %s781_s23  ;;  %v649_v45 = vsel %vm80_vm1, %v647_v43, %v644_v42  ;;  %v620_v47 = vld [vmem:[#allocation0 + $0x1] ss:$16 sm:%s619_s5]   ;;  %s684_s8 = smov 3  ;;  %s687_s9 = smov 12 }
  0x4a   :  { %v654_v48 = vsel %vm85_vm2, %v652_v44, %v649_v45  ;;  %v622_v49 = vsel %vm75_vm0, %v620_v47, %v617_v46  ;;  %v625_v50 = vld [vmem:[#allocation0 + $0x1] ss:$16 sm:%s624_s6]   ;;  %s782_s10 = smov 16   ;;  %v685_v53 = vld [vmem:[#allocation0 + $0x89] ss:$16 sm:%s684_s8]   ;;  %s692_s11 = smov 48 }
  0x4b   :  { %v630_v51 = vld [vmem:[#allocation0 + $0x1] ss:$16 sm:%s629_s7]   ;;  %655 = vrot.lane.b32.xlu1 %v654_v48, %s782_s10  ;;  %v627_v52 = vsel %vm80_vm1, %v625_v50, %v622_v49  ;;  %v688_v54 = vld [vmem:[#allocation0 + $0x89] ss:$16 sm:%s687_s9]   ;;  %s697_s12 = smov 192  ;;  %s661_s13 = smov 3 }
  0x4c   :  { %v12_v55 = vld [vmem:[#allocation0] ss:$8 sm:$0xf]   ;;  %v632_v56 = vsel %vm85_vm2, %v630_v51, %v627_v52  ;;  %v690_v57 = vsel %vm75_vm0, %v688_v54, %v685_v53  ;;  %v693_v58 = vld [vmem:[#allocation0 + $0x89] ss:$16 sm:%s692_s11]   ;;  %s664_s14 = smov 12 }
  0x4d   :  { %v698_v59 = vld [vmem:[#allocation0 + $0x89] ss:$16 sm:%s697_s12]   ;;  %633 = vrot.lane.b32.xlu0 %v632_v56, %s782_s10  ;;  %v695_v60 = vsel %vm80_vm1, %v693_v58, %v690_v57  ;;  %v662_v61 = vld [vmem:[#allocation0 + $0x81] ss:$16 sm:%s661_s13]   ;;  %s669_s15 = smov 48  ;;  %s674_s16 = smov 192 }
  0x4e   :  { %v665_v62 = vld [vmem:[#allocation0 + $0x81] ss:$16 sm:%s664_s14]   ;;  %v700_v63 = vsel %vm85_vm2, %v698_v59, %v695_v60  ;;  %v13_v4 = vld [vmem:[#allocation0] ss:$8 sm:$0xf0]  }
  0x4f   :  { %v667_v0 = vsel %vm75_vm0, %v665_v62, %v662_v61  ;;  %v670_v1 = vld [vmem:[#allocation0 + $0x81] ss:$16 sm:%s669_s15]   ;;  %701 = vrot.lane.b32.xlu1 %v700_v63, %s782_s10  ;;  %v25_v5 = vld [vmem:[#allocation0 + $0x40] ss:$8 sm:$0xf]   ;;  %v15_v7 = vsel %vm14_vm3, %v13_v4, %v12_v55 }
  0x50   :  { %v675_v2 = vld [vmem:[#allocation0 + $0x81] ss:$16 sm:%s674_s16]   ;;  %v672_v3 = vsel %vm80_vm1, %v670_v1, %v667_v0  ;;  %v27_v8 = vld [vmem:[#allocation0 + $0x40] ss:$8 sm:$0xf0]  }
  0x51   :  { %v677_v6 = vsel %vm85_vm2, %v675_v2, %v672_v3  ;;  %v40_v9 = vld [vmem:[#allocation0 + $0x80] ss:$8 sm:$0xf]   ;;  %17 = vst.msk [vmem:[%s1066_s1] ss:$8 sm:$0x3] %vm16_vm4, %v15_v7   ;;  %v29_v10 = vsel %vm14_vm3, %v27_v8, %v25_v5 }
  0x52   :  { %678 = vrot.lane.b32.xlu0 %v677_v6, %s782_s10  ;;  %707 = vst.msk [vmem:[%s1066_s1 - $0xf] ss:$8 sm:$0xc] %vm16_vm4, %v15_v7   ;;  %708 = vst.msk [vmem:[%s1066_s1 - $0x1e] ss:$8 sm:$0x30] %vm16_vm4, %v15_v7  }
  0x53   :  { %709 = vst.msk [vmem:[%s1066_s1 - $0x2d] ss:$8 sm:$0xc0] %vm16_vm4, %v15_v7   ;;  %v42_v11 = vld [vmem:[#allocation0 + $0x80] ss:$8 sm:$0xf0]  }
  0x54   :  { %v55_v12 = vld [vmem:[#allocation0 + $0xc0] ss:$8 sm:$0xf]   ;;  %710 = vst.msk [vmem:[%s1066_s1 + $0x4] ss:$8 sm:$0x3] %vm16_vm4, %v29_v10   ;;  %v44_v13 = vsel %vm14_vm3, %v42_v11, %v40_v9 }
  0x55   :  { %711 = vst.msk [vmem:[%s1066_s1 - $0xb] ss:$8 sm:$0xc] %vm16_vm4, %v29_v10   ;;  %712 = vst.msk [vmem:[%s1066_s1 - $0x1a] ss:$8 sm:$0x30] %vm16_vm4, %v29_v10  }
  0x56   :  { %713 = vst.msk [vmem:[%s1066_s1 - $0x29] ss:$8 sm:$0xc0] %vm16_vm4, %v29_v10   ;;  %v57_v14 = vld [vmem:[#allocation0 + $0xc0] ss:$8 sm:$0xf0]  }
  0x57   :  { %714 = vst.msk [vmem:[%s1066_s1 + $0x10] ss:$8 sm:$0x3] %vm16_vm4, %v44_v13   ;;  %715 = vst.msk [vmem:[%s1066_s1 + $0x1] ss:$8 sm:$0xc] %vm16_vm4, %v44_v13   ;;  %v59_v15 = vsel %vm14_vm3, %v57_v14, %v55_v12 }
  0x58   :  { %716 = vst.msk [vmem:[%s1066_s1 - $0xe] ss:$8 sm:$0x30] %vm16_vm4, %v44_v13   ;;  %717 = vst.msk [vmem:[%s1066_s1 - $0x1d] ss:$8 sm:$0xc0] %vm16_vm4, %v44_v13  }
  0x59   :  { %718 = vst.msk [vmem:[%s1066_s1 + $0x14] ss:$8 sm:$0x3] %vm16_vm4, %v59_v15   ;;  %719 = vst.msk [vmem:[%s1066_s1 + $0x5] ss:$8 sm:$0xc] %vm16_vm4, %v59_v15  }
  0x5a   :  { %720 = vst.msk [vmem:[%s1066_s1 - $0xa] ss:$8 sm:$0x30] %vm16_vm4, %v59_v15   ;;  %721 = vst.msk [vmem:[%s1066_s1 - $0x19] ss:$8 sm:$0xc0] %vm16_vm4, %v59_v15  }
  0x8a   :  { %v133_v16 = vpop.permute.xlu1 %132  }
  0x8b   :  { %723 = vst.msk [vmem:[%s1066_s1 + $0x10] sm:$0xff] %vm89_vm5, %v133_v16  }
  0x8d   :  { %v88_v17 = vpop.permute.xlu0 %87  }
  0x8e   :  { %90 = vst.msk [vmem:[%s1066_s1] sm:$0xff] %vm89_vm5, %v88_v17   ;;  %v156_v18 = vpop.permute.xlu1 %155  }
  0x8f   :  { %724 = vst.msk [vmem:[%s1066_s1 + $0x18] sm:$0xff] %vm89_vm5, %v156_v18  }
  0x91   :  { %v110_v19 = vpop.permute.xlu0 %109  }
  0x92   :  { %722 = vst.msk [vmem:[%s1066_s1 + $0x8] sm:$0xff] %vm89_vm5, %v110_v19  }
  0x93   :  { %v201_v20 = vpop.permute.xlu1 %200  }
  0x94   :  { %725 = vst.msk [vmem:[%s1066_s1 + $0x8] sm:$0xff] %vm180_vm6, %v201_v20  }
  0x95   :  { %v179_v21 = vpop.permute.xlu0 %178  }
  0x96   :  { %181 = vst.msk [vmem:[%s1066_s1] sm:$0xff] %vm180_vm6, %v179_v21  }
  0x97   :  { %v247_v22 = vpop.permute.xlu1 %246  }
  0x98   :  { %727 = vst.msk [vmem:[%s1066_s1 + $0x18] sm:$0xff] %vm180_vm6, %v247_v22  }
  0x99   :  { %v224_v23 = vpop.permute.xlu0 %223  }
  0x9a   :  { %726 = vst.msk [vmem:[%s1066_s1 + $0x10] sm:$0xff] %vm180_vm6, %v224_v23  }
  0x9b   :  { %v292_v24 = vpop.permute.xlu1 %291  }
  0x9c   :  { %728 = vst.msk [vmem:[%s1066_s1 + $0x8] sm:$0xff] %vm271_vm7, %v292_v24  }
  0x9d   :  { %v270_v25 = vpop.permute.xlu0 %269  }
  0x9e   :  { %272 = vst.msk [vmem:[%s1066_s1] sm:$0xff] %vm271_vm7, %v270_v25  }
  0x9f   :  { %v338_v26 = vpop.permute.xlu1 %337  }
  0xa0   :  { %730 = vst.msk [vmem:[%s1066_s1 + $0x18] sm:$0xff] %vm271_vm7, %v338_v26  }
  0xa1   :  { %v315_v27 = vpop.permute.xlu0 %314  }
  0xa2   :  { %729 = vst.msk [vmem:[%s1066_s1 + $0x10] sm:$0xff] %vm271_vm7, %v315_v27  }
  0xa4   :  { %v383_v28 = vpop.permute.xlu1 %382  }
  0xa5   :  { %731 = vst.msk [vmem:[%s1066_s1 + $0x8] sm:$0xff] %vm362_vm8, %v383_v28   ;;  %v361_v29 = vpop.permute.xlu0 %360  }
  0xa6   :  { %363 = vst.msk [vmem:[%s1066_s1] sm:$0xff] %vm362_vm8, %v361_v29  }
  0xa8   :  { %v429_v30 = vpop.permute.xlu1 %428  }
  0xa9   :  { %733 = vst.msk [vmem:[%s1066_s1 + $0x18] sm:$0xff] %vm362_vm8, %v429_v30  }
  0xaa   :  { %v406_v31 = vpop.permute.xlu0 %405  }
  0xab   :  { %732 = vst.msk [vmem:[%s1066_s1 + $0x10] sm:$0xff] %vm362_vm8, %v406_v31  }
  0xac   :  { %v474_v32 = vpop.permute.xlu1 %473  }
  0xad   :  { %734 = vst.msk [vmem:[%s1066_s1 + $0x8] sm:$0xff] %vm453_vm9, %v474_v32  }
  0xae   :  { %v452_v33 = vpop.permute.xlu0 %451  }
  0xaf   :  { %454 = vst.msk [vmem:[%s1066_s1] sm:$0xff] %vm453_vm9, %v452_v33  }
  0xb0   :  { %v520_v34 = vpop.permute.xlu1 %519  }
  0xb1   :  { %736 = vst.msk [vmem:[%s1066_s1 + $0x18] sm:$0xff] %vm453_vm9, %v520_v34  }
  0xb2   :  { %v497_v35 = vpop.permute.xlu0 %496  }
  0xb3   :  { %735 = vst.msk [vmem:[%s1066_s1 + $0x10] sm:$0xff] %vm453_vm9, %v497_v35  }
  0xb5   :  { %v565_v36 = vpop.permute.xlu1 %564  }
  0xb6   :  { %737 = vst.msk [vmem:[%s1066_s1 + $0x8] sm:$0xff] %vm544_vm10, %v565_v36   ;;  %v543_v37 = vpop.permute.xlu0 %542  }
  0xb7   :  { %545 = vst.msk [vmem:[%s1066_s1] sm:$0xff] %vm544_vm10, %v543_v37  }
  0xb9   :  { %v611_v38 = vpop.permute.xlu1 %610  }
  0xba   :  { %739 = vst.msk [vmem:[%s1066_s1 + $0x18] sm:$0xff] %vm544_vm10, %v611_v38  }
  0xbb   :  { %v588_v39 = vpop.permute.xlu0 %587  }
  0xbc   :  { %738 = vst.msk [vmem:[%s1066_s1 + $0x10] sm:$0xff] %vm544_vm10, %v588_v39  }
  0xbd   :  { %v656_v40 = vpop.permute.xlu1 %655  }
  0xbe   :  { %740 = vst.msk [vmem:[%s1066_s1 + $0x8] sm:$0xff] %vm635_vm11, %v656_v40  }
  0xbf   :  { %v634_v41 = vpop.permute.xlu0 %633  }
  0xc0   :  { %636 = vst.msk [vmem:[%s1066_s1] sm:$0xff] %vm635_vm11, %v634_v41  }
  0xc1   :  { %v702_v42 = vpop.permute.xlu1 %701  }
  0xc2   :  { %742 = vst.msk [vmem:[%s1066_s1 + $0x18] sm:$0xff] %vm635_vm11, %v702_v42  }
  0xc4   :  { %v679_v43 = vpop.permute.xlu0 %678  }
  0xc5   :  { %741 = vst.msk [vmem:[%s1066_s1 + $0x10] sm:$0xff] %vm635_vm11, %v679_v43  }
  0xc6   :  { %706 = vsyncpa [#allocation1], 1 }

// kernel: stagenet_forward.1
= control target key start
LH: loop header
LB: loop body
LE: loop exit
PB: predicated region body
PF: predicated region fallthrough
CT: control target
= control target key end

     0   :  { %s1672_s0 = inlined_call_operand.vmem [shape: bf16[2,2,64,256], index: 0, kind: input, shape index: {}]   ;;  %s1673_s1 = inlined_call_operand.vmem [shape: f32[2,8,256], index: 1, kind: input, shape index: {}]   ;;  %s1674_s2 = inlined_call_operand.vmem [shape: f32[2,8,256], index: 2, kind: input, shape index: {}]   ;;  %s1675_s3 = inlined_call_operand.vmem [shape: f32[9], index: 3, kind: input, shape index: {}]   ;;  %s1676_s4 = inlined_call_operand.vmem [shape: bf16[2,64,256], index: 4, kind: output, shape index: {0}]   ;;  %s1677_s5 = inlined_call_operand.vmem [shape: f32[2,8,256], index: 5, kind: output, shape index: {1}]   ;;  %s1678_s6 = inlined_call_operand.vmem [shape: f32[2,1,256], index: 6, kind: output, shape index: {2}]  }
   0x1   :  { %1682 = sst [smem:[#allocation10_spill]] %s1672_s0 }
   0x2   :  { %1683 = sst [smem:[#allocation11_spill]] %s1675_s3 }
   0x3   :  { %12 = vsyncpa [#allocation4], 0  ;;  %s1395_s21 = smov 0   ;;  %s1397_s22 = smov 0  }
   0x4   :  { %s1399_s23 = smov 0   ;;  %s1401_s24 = smov 0  }
   0x5   :  { %s1403_s25 = smov 0  }
   0x6 LB: > { %1684 = sst [smem:[#allocation6_spill]] %s1340_s22  ;;  %s1150_s26 = sadd.s32 4294967295, %s1352_s25   ;;  %s1352_s25 = sphi %s1403_s25, %s18_s25   ;;  %s1348_s24 = sphi %s1401_s24, %s1698_s24   ;;  %s1344_s23 = sphi %s1399_s23, %s1697_s23   ;;  %s1340_s22 = sphi %s1397_s22, %s1696_s22   ;;  %s1336_s21 = sphi %s1395_s21, %s1695_s21  }
   0x7   : > { %1685 = sst [smem:[#allocation7_spill]] %s1348_s24  ;;  %s30_s27 = sadd.s32 1, %s1348_s24 }
   0x8   : > { %p32_p0 = scmp.ge.s32.totalorder %s30_s27, 2  ;;  %s39_s28 = sadd.s32 1, %s1340_s22 }
   0x9   : > { %p46_p1 = scmp.ne.s32.totalorder %s1340_s22, %s1336_s21  ;;  %p47_p2 = scmp.eq.s32.totalorder %s1352_s25, 0 }
   0xa   : > { %s1700_s27 = smov (%p32_p0, %s30_s27), 0  ;;  %p1152_p4 = scmp.ge.s32.totalorder %s1352_s25, 1 }
   0xb   : > { %1686 = sst [smem:[#allocation8_spill]] %s1700_s27  ;;  %p1428_p3 = por %p47_p2, %p46_p1 }
   0xc   : > { %s34_s30 = ssub.s32 %s1348_s24, %s1700_s27  ;;  %p224_p5 = scmp.lt.s32.totalorder %s1352_s25, 3 }
   0xd   : > { %p37_p6 = scmp.eq.s32.totalorder %s34_s30, 0  ;;  %p1440_p8 = scmp.eq.s32.totalorder %s1150_s26, 0 }
   0xe   : > { %p1436_p7 = pnand %p1152_p4, %p224_p5  ;;  %s1691_s3 = sld [smem:[#allocation11_spill]] }
   0xf   : > { %s1445_s9 = scalar_select %p37_p6, %s1340_s22, %s39_s28  }
  0x10   : > { %p1220_p9 = pneg %p1436_p7 }
  0x11   : > { %1690 = sst [smem:[#allocation9_spill]] %s1445_s9 }
  0x12   : > { %p1221_p10 = pnand %p1440_p8, %p1220_p9 }
  0x14   : > { %s237_s12 = sshll.u32 %s1691_s3, 4  ;;  %p1293_p12 = pneg %p1221_p10  ;;  %s238_s12 = int_to_ptr.vmem [resolvable:$true] %s237_s12 }
  0x15   : > { %s1291_s13 = scalar_lea.vmem %s238_s12, 16  ;;  %p1299_p1 = scmp.lt.s32.totalorder %s238_s12, %s238_s12 }
  0x16   : > { %p1292_p11 = scmp.ne.s32.totalorder %s238_s12, %s1291_s13  ;;  %p1300_p2 = scmp.lt.s32.totalorder %s1291_s13, %s1291_s13 }
  0x18   : > { %p1294_p13 = pnand %p1293_p12, %p1292_p11  ;;  %p1301_p4 = por %p1300_p2, %p1299_p1 }
  0x1a   : > { %p1295_p0 = pneg %p1294_p13 }
  0x1c   : > { %p1302_p5 = pnand %p1301_p4, %p1295_p0 }
  0x1e   : > { %1305 = shalt.err (!%p1302_p5)
}
  0x1f   : > { %s1358_s14 = smov [#allocation3]   ;;  %p1154_p6 = scmp.ge.s32.totalorder %s1352_s25, 2 }
  0x20   : > { %1223 = dma.vmem_to_smem (!%p1221_p10), %s238_s12, 16, %s1358_s14, [#allocation4]  }
  0x21   : > { %244 = sbr.rel (%p1154_p6) target bundleno = 58 (0x3a), region = 20 }
  0x28   : > { %247 = sbr.rel (!%p1428_p3) target bundleno = 58 (0x3a), region = 24  ;;  %s249_s15 = sand.u32 (%p1428_p3), 1, %s1340_s22  }
  0x29   : > { %s1203_s16 = sshll.u32 (%p1428_p3), %s1348_s24, 6  ;;  %s1155_s17 = sshll.u32 (%p1428_p3), %s249_s15, 7 }
  0x2a   : > { %s1692_s0 = sld [smem:[#allocation10_spill]] (%p1428_p3)  ;;  %s251_s26 = scalar_lea.vmem (%p1428_p3), [#allocation2], %s1155_s17 }
  0x30   : > { %s1462_s20 = scalar_lea.vmem %s1692_s0, %s1203_s16 }
  0x31   : > { %v314_v0 = vld [vmem:[%s1462_s20] sm:$0xff]  ;;  %v316_v1 = vld [vmem:[%s1462_s20 + $0x8] sm:$0xff]  ;;  %v318_v2 = vld [vmem:[%s1462_s20 + $0x10] sm:$0xff] }
  0x32   : > { %315 = vst [vmem:[%s251_s26] sm:$0xff] %v314_v0  ;;  %317 = vst [vmem:[%s251_s26 + $0x8] sm:$0xff] %v316_v1  ;;  %v320_v3 = vld [vmem:[%s1462_s20 + $0x18] sm:$0xff]  ;;  %v322_v4 = vld [vmem:[%s1462_s20 + $0x20] sm:$0xff] }
  0x33   : > { %319 = vst [vmem:[%s251_s26 + $0x10] sm:$0xff] %v318_v2  ;;  %v324_v5 = vld [vmem:[%s1462_s20 + $0x28] sm:$0xff]  ;;  %321 = vst [vmem:[%s251_s26 + $0x18] sm:$0xff] %v320_v3  ;;  %v326_v6 = vld [vmem:[%s1462_s20 + $0x30] sm:$0xff] }
  0x34   : > { %323 = vst [vmem:[%s251_s26 + $0x20] sm:$0xff] %v322_v4  ;;  %325 = vst [vmem:[%s251_s26 + $0x28] sm:$0xff] %v324_v5  ;;  %v328_v7 = vld [vmem:[%s1462_s20 + $0x38] sm:$0xff]  ;;  %v330_v8 = vld [vmem:[%s1462_s20 + $0x80] sm:$0xff] }
  0x35   : > { %327 = vst [vmem:[%s251_s26 + $0x30] sm:$0xff] %v326_v6  ;;  %329 = vst [vmem:[%s251_s26 + $0x38] sm:$0xff] %v328_v7  ;;  %v332_v9 = vld [vmem:[%s1462_s20 + $0x88] sm:$0xff]  ;;  %v334_v10 = vld [vmem:[%s1462_s20 + $0x90] sm:$0xff] }
  0x36   : > { %331 = vst [vmem:[%s251_s26 + $0x40] sm:$0xff] %v330_v8  ;;  %v336_v11 = vld [vmem:[%s1462_s20 + $0x98] sm:$0xff]  ;;  %333 = vst [vmem:[%s251_s26 + $0x48] sm:$0xff] %v332_v9  ;;  %v338_v12 = vld [vmem:[%s1462_s20 + $0xa0] sm:$0xff] }
  0x37   : > { %335 = vst [vmem:[%s251_s26 + $0x50] sm:$0xff] %v334_v10  ;;  %337 = vst [vmem:[%s251_s26 + $0x58] sm:$0xff] %v336_v11  ;;  %v340_v13 = vld [vmem:[%s1462_s20 + $0xa8] sm:$0xff]  ;;  %v342_v14 = vld [vmem:[%s1462_s20 + $0xb0] sm:$0xff] }
  0x38   : > { %339 = vst [vmem:[%s251_s26 + $0x60] sm:$0xff] %v338_v12  ;;  %341 = vst [vmem:[%s251_s26 + $0x68] sm:$0xff] %v340_v13  ;;  %v344_v15 = vld [vmem:[%s1462_s20 + $0xb8] sm:$0xff] }
  0x39   : > { %343 = vst [vmem:[%s251_s26 + $0x70] sm:$0xff] %v342_v14  ;;  %345 = vst [vmem:[%s251_s26 + $0x78] sm:$0xff] %v344_v15 }
  0x3a PF: > { %380 = sbr.rel (%p1436_p7) target bundleno = 255 (0xff), region = 70  ;;  %s383_s28 = sand.u32 (!%p1436_p7), 1, %s1336_s21  }
  0x3b   : > { %s1483_s29 = sshll.u32 (!%p1436_p7), %s383_s28, 7 }
  0x41   : > { %1331 = dma.done.wait (%p1440_p8), [#allocation4], 16  }
  0x42   : > { %1333 = vsyncadd (%p1440_p8), [#allocation4], 4294967280 }
  0x43   : > { %393 = sfence }
  0x44   : > { %p458_p3 = scmp.lt.s32.totalorder %s1344_s23, 1  ;;  %s1491_s10 = sld [smem:[#allocation3]] }
  0x45   : > { %s1493_s7 = sld [smem:[#allocation3 + $0x1]]  ;;  %s1495_s11 = sld [smem:[#allocation3 + $0x2]] }
  0x46   : > { %s1702_s23 = smov (!%p458_p3, %s1344_s23), 1  ;;  %s1498_s21 = sld [smem:[#allocation3 + $0x3]] }
  0x47   : > { %s1500_s12 = sld [smem:[#allocation3 + $0x4]]  ;;  %s1502_s13 = sshll.u32 %s1702_s23, 4 }
  0x48   : > { %s1206_s8 = sshll.u32 %s1702_s23, 6  ;;  %s465_s16 = scalar_lea.vmem %s1673_s1, %s1502_s13 }
  0x49   : > { %s475_s19 = scalar_lea.vmem %s1674_s2, %s1502_s13  ;;  %s1515_s28 = scalar_lea.vmem %s1676_s4, %s1206_s8 }
  0x4a   : > { %s1169_s27 = sshll.u32 %s1702_s23, 1  ;;  %s1521_s24 = sld [smem:[#allocation3 + $0x5]] }
  0x4b   : > { %s1526_s14 = scalar_lea.vmem %s1678_s6, %s1169_s27  ;;  %s1528_s15 = sld [smem:[#allocation3 + $0x6]] }
  0x4c   : > { %s1530_s17 = sld [smem:[#allocation3 + $0x7]]  ;;  %s1532_s18 = sld [smem:[#allocation3 + $0x8]] }
  0x4d   : > { %s1534_s8 = smov 0  }
  0x4e LB: >> { %v550_v16 = vlaneseq  ;;  %v1359_v17 = vmov 1966171168   ;;  %s1178_s0 = sshll.u32 %s1356_s8, 7  ;;  %s1693_s26 = scalar_lea.vmem [#allocation2], %s1483_s29  ;;  %s1356_s8 = sphi %s1534_s8, %s520_s8  }
  0x4f   : >> { %v548_v18 = vunpack.c.l.s4 %v1359_v17  ;;  %s1543_s22 = sshra.s32 %s1178_s0, 7  ;;  %s520_s8 = sadd.s32 1, %s1356_s8  }
  0x50   : >> { %v1541_v19 = vshrl.u32 %v550_v16, 7  ;;  %s1546_s23 = sshll.u32 %s1543_s22, 3  ;;  %s1180_s27 = sshll.u32 %s1543_s22, 2  ;;  %vm896_vm5 = vcmp.lt.s32.totalorder %v550_v16, 128 }
  0x51   : >> { %v549_v20 = vunpack.c.0.s8 %v548_v18  ;;  %s525_s20 = scalar_lea.vmem %s465_s16, %s1546_s23  ;;  %s1559_s3 = scalar_lea.vmem %s1693_s26, %s1180_s27 [#allocation2] }
  0x52   : >> { %v526_v22 = vld [vmem:[%s525_s20] sm:$0xff]  ;;  %v531_v24 = vld [vmem:[%s1559_s3 + $0x10] ss:$8 sps:$4 sm:$0xff]   ;;  %v597_v28 = vsub.s32 0, %v1541_v19  ;;  %s884_s9 = scalar_lea.vmem %s475_s19, %s1546_s23  ;;  %s893_s30 = scalar_lea.vmem %s1526_s14, %s1543_s22 }
  0x53   : >> { %v552_v21 = vsub.s32 %v549_v20, %v1541_v19  ;;  %v529_v23 = vld [vmem:[%s1559_s3] ss:$8 sps:$4 sm:$0xff]   ;;  %v546_v26 = vcombine.high %v526_v22, %v526_v22  ;;  %v535_v29 = vld [vmem:[%s1559_s3 + $0x30] ss:$8 sps:$4 sm:$0xff]   ;;  %v539_v36 = vunpack.c.l.bf16 %v531_v24  ;;  %v540_v37 = vunpack.c.h.bf16 %v531_v24  ;;  %p517_p7 = scmp.ge.s32.totalorder %s520_s8, 2  }
  0x54   : >> { %v533_v25 = vld [vmem:[%s1559_s3 + $0x20] ss:$8 sps:$4 sm:$0xff]   ;;  %v537_v30 = vunpack.c.l.bf16 %v529_v23  ;;  %v538_v35 = vunpack.c.h.bf16 %v529_v23  ;;  %v543_v44 = vunpack.c.l.bf16 %v535_v29  ;;  %v1184_v46 = vld [vmem:[%s1559_s3 + $0x50] ss:$8 sps:$4 sm:$0xff]   ;;  %v544_v10 = vunpack.c.h.bf16 %v535_v29 }
  0x55   : >> { %v553_v27 = vrot.slane %v526_v22, %v552_v21  ;;  %v560_v31 = vrot.slane %v546_v26, %v552_v21  ;;  %v1182_v34 = vld [vmem:[%s1559_s3 + $0x40] ss:$8 sps:$4 sm:$0xff]   ;;  %v541_v38 = vunpack.c.l.bf16 %v533_v25  ;;  %v542_v43 = vunpack.c.h.bf16 %v533_v25  ;;  %v1188_v7 = vld [vmem:[%s1559_s3 + $0x70] ss:$8 sps:$4 sm:$0xff]  }
  0x56   : >> { %v705_v47 = vunpack.c.l.bf16 %v1182_v34  ;;  %v1186_v55 = vld [vmem:[%s1559_s3 + $0x60] ss:$8 sps:$4 sm:$0xff]   ;;  %v706_v56 = vunpack.c.h.bf16 %v1182_v34  ;;  %v707_v60 = vunpack.c.l.bf16 %v1184_v46  ;;  %v708_v0 = vunpack.c.h.bf16 %v1184_v46  ;;  %s1621_s3 = scalar_lea.vmem %s1515_s28, %s1180_s27 }
  0x57   : >> { %v561_v32 = vcombine.high %v553_v27, %v553_v27  ;;  %v569_v33 = vrot.slane %v553_v27, %v552_v21  ;;  %v562_v39 = vcombine.high %v560_v31, %v560_v31  ;;  %v576_v40 = vrot.slane %v560_v31, %v552_v21 }
  0x58   : >> { %v709_v4 = vunpack.c.l.bf16 %v1186_v55  ;;  %v710_v13 = vunpack.c.h.bf16 %v1186_v55  ;;  %v711_v22 = vunpack.c.l.bf16 %v1188_v7 }
  0x59   : >> { %v583_v41 = vrot.slane %v561_v32, %v552_v21  ;;  %v591_v42 = vcombine.high %v569_v33, %v569_v33  ;;  %v598_v45 = vrot.slane %v569_v33, %v597_v28  ;;  %v590_v48 = vrot.slane %v562_v39, %v552_v21 }
  0x5a   : >> { %v592_v49 = vcombine.high %v576_v40, %v576_v40  ;;  %v614_v53 = vrot.slane %v576_v40, %v597_v28 }
  0x5b   : >> { %v593_v50 = vcombine.high %v583_v41, %v583_v41  ;;  %v602_v51 = vrot.slane %v583_v41, %v597_v28  ;;  %v606_v52 = vrot.slane %v591_v42, %v597_v28  ;;  %v635_v54 = vsub.f32 %v598_v45, %v537_v30 }
  0x5c   : >> { %v594_v57 = vcombine.high %v590_v48, %v590_v48  ;;  %v618_v59 = vrot.slane %v590_v48, %v597_v28  ;;  %v622_v1 = vrot.slane %v592_v49, %v597_v28  ;;  %v639_v3 = vsub.f32 %v614_v53, %v541_v38 }
  0x5d   : >> { %v610_v58 = vrot.slane %v593_v50, %v597_v28  ;;  %v636_v61 = vsub.f32 %v602_v51, %v538_v35  ;;  %v637_v62 = vsub.f32 %v606_v52, %v539_v36  ;;  %v1570_v63 = vmul.f32 %v635_v54, %v635_v54 }
  0x5e   : >> { %v713_v8 = vsub.f32 %v598_v45, %v705_v47  ;;  %v714_v9 = vsub.f32 %v602_v51, %v706_v56  ;;  %v626_v11 = vrot.slane %v594_v57, %v597_v28  ;;  %v640_v12 = vsub.f32 %v618_v59, %v542_v43 }
  0x5f   : >> { %v638_v2 = vsub.f32 %v610_v58, %v540_v37  ;;  %v1572_v5 = vmul.f32 %v636_v61, %v636_v61  ;;  %v1574_v6 = vmul.f32 %v637_v62, %v637_v62  ;;  %v715_v17 = vsub.f32 %v606_v52, %v707_v60 }
  0x60   : >> { %v716_v18 = vsub.f32 %v610_v58, %v708_v0  ;;  %v641_v20 = vsub.f32 %v622_v1, %v543_v44  ;;  %v1581_v21 = vmul.f32 %v639_v3, %v639_v3  ;;  %v717_v23 = vsub.f32 %v614_v53, %v709_v4 }
  0x61   : >> { %v1577_v14 = vmul.f32 %v638_v2, %v638_v2  ;;  %v651_v15 = vadd.f32 %v1572_v5, %v1570_v63  ;;  %v1584_v25 = vmul.f32 %v713_v8, %v713_v8  ;;  %v1586_v26 = vmul.f32 %v714_v9, %v714_v9 }
  0x62   : >> { %v1588_v27 = vmul.f32 %v715_v17, %v715_v17  ;;  %v642_v28 = vsub.f32 %v626_v11, %v544_v10  ;;  %v1590_v29 = vmul.f32 %v640_v12, %v640_v12  ;;  %v712_v30 = vunpack.c.h.bf16 %v1188_v7 }
  0x63   : >> { %v652_v24 = vadd.f32 %v651_v15, %v1574_v6  ;;  %v718_v32 = vsub.f32 %v618_v59, %v710_v13  ;;  %v1593_v33 = vmul.f32 %v716_v18, %v716_v18  ;;  %v729_v34 = vadd.f32 %v1586_v26, %v1584_v25 }
  0x64   : >> { %v649_v35 = vmul.f32 %v641_v20, %v641_v20  ;;  %v719_v37 = vsub.f32 %v622_v1, %v711_v22  ;;  %v1598_v38 = vmul.f32 %v717_v23, %v717_v23  ;;  %v650_v40 = vmul.f32 %v642_v28, %v642_v28 }
  0x65   : >> { %v653_v31 = vadd.f32 %v652_v24, %v1577_v14  ;;  %v730_v39 = vadd.f32 %v729_v34, %v1588_v27  ;;  %v720_v42 = vsub.f32 %v626_v11, %v712_v30  ;;  %v726_v43 = vmul.f32 %v718_v32, %v718_v32 }
  0x66   : >> { %v727_v46 = vmul.f32 %v719_v37, %v719_v37 }
  0x67   : >> { %v654_v36 = vadd.f32 %v653_v31, %v1581_v21  ;;  %v731_v44 = vadd.f32 %v730_v39, %v1593_v33  ;;  %v728_v49 = vmul.f32 %v720_v42, %v720_v42 }
  0x69   : >> { %v655_v41 = vadd.f32 %v654_v36, %v1590_v29  ;;  %v732_v47 = vadd.f32 %v731_v44, %v1598_v38 }
  0x6b   : >> { %v656_v45 = vadd.f32 %v655_v41, %v649_v35  ;;  %v733_v50 = vadd.f32 %v732_v47, %v726_v43 }
  0x6d   : >> { %v657_v48 = vadd.f32 %v656_v45, %v650_v40  ;;  %v734_v52 = vadd.f32 %v733_v50, %v727_v46 }
  0x6f   : >> { %v658_v51 = vmul.f32 0.5, %v657_v48  ;;  %v735_v54 = vadd.f32 %v734_v52, %v728_v49 }
  0x71   : >> { %v659_v53 = vrot.slane %v658_v51, 4  ;;  %v736_v56 = vmul.f32 0.5, %v735_v54 }
  0x73   : >> { %v660_v55 = vmax.f32 %v658_v51, %v659_v53  ;;  %v737_v58 = vrot.slane %v736_v56, 4 }
  0x75   : >> { %v661_v57 = vrot.slane %v660_v55, 2  ;;  %v738_v60 = vmax.f32 %v736_v56, %v737_v58 }
  0x77   : >> { %v662_v59 = vmax.f32 %v660_v55, %v661_v57  ;;  %v739_v62 = vrot.slane %v738_v60, 2 }
  0x79   : >> { %v663_v61 = vrot.slane %v662_v59, 1  ;;  %v740_v1 = vmax.f32 %v738_v60, %v739_v62  ;;  %v784_v62 = vstv %s1532_s18 }
  0x7b   : >> { %v664_v0 = vmax.f32 %v662_v59, %v663_v61  ;;  %v741_v3 = vrot.slane %v740_v1, 1  ;;  %v786_v61 = vstv %s1493_s7 }
  0x7d   : >> { %v665_v2 = vsub.f32 %v658_v51, %v664_v0  ;;  %v742_v7 = vmax.f32 %v740_v1, %v741_v3  ;;  %v792_v1 = vstv %s1498_s21 }
  0x7f   : >> { %v666_v4 = vmul.f32 1.442695, %v665_v2  ;;  %v743_v8 = vsub.f32 %v736_v56, %v742_v7 }
  0x81   : >> { %1277 = vpow2.f32 %v666_v4  ;;  %v744_v9 = vmul.f32 1.442695, %v743_v8 }
  0x83   : >> { %1279 = vpow2.f32 %v744_v9 }
  0x8b   : >> { %v1278_v10 = vpop.eup %1277 }
  0x8c   : >> { %v668_v11 = vrot.slane %v1278_v10, 4 }
  0x8d   : >> { %v1280_v13 = vpop.eup %1279 }
  0x8e   : >> { %v669_v12 = vadd.f32 %v1278_v10, %v668_v11  ;;  %v746_v17 = vrot.slane %v1280_v13, 4 }
  0x90   : >> { %v670_v15 = vrot.slane %v669_v12, 2  ;;  %v747_v20 = vadd.f32 %v1280_v13, %v746_v17 }
  0x92   : >> { %v671_v18 = vadd.f32 %v670_v15, %v669_v12  ;;  %v748_v23 = vrot.slane %v747_v20, 2 }
  0x94   : >> { %v672_v22 = vrot.slane %v671_v18, 1  ;;  %v749_v28 = vadd.f32 %v748_v23, %v747_v20  ;;  %v795_v20 = vstv %s1500_s12 }
  0x96   : >> { %v673_v24 = vadd.f32 %v672_v22, %v671_v18  ;;  %v750_v30 = vrot.slane %v749_v28, 1 }
  0x98   : >> { %1281 = vrcp.f32 %v673_v24  ;;  %v751_v31 = vadd.f32 %v750_v30, %v749_v28 }
  0x9a   : >> { %1283 = vrcp.f32 %v751_v31  ;;  %v798_v31 = vstv %s1521_s24 }
  0xa2   : >> { %v1282_v32 = vpop.eup %1281 }
  0xa3   : >> { %v675_v34 = vmul.f32 %v1282_v32, %v1278_v10 }
  0xa4   : >> { %v1284_v37 = vpop.eup %1283 }
  0xa5   : >> { %v676_v36 = vmul.f32 0.35355338, %v675_v34  ;;  %v753_v41 = vmul.f32 %v1284_v37, %v1280_v13 }
  0xa7   : >> { %v677_v39 = vadd.f32 1e-08, %v676_v36  ;;  %v754_v42 = vmul.f32 0.35355338, %v753_v41  ;;  %v683_v44 = vmul.f32 %v676_v36, %v1590_v29  ;;  %v684_v45 = vmul.f32 %v676_v36, %v649_v35 }
  0xa8   : >> { %v685_v51 = vmul.f32 %v676_v36, %v650_v40  ;;  %v678_v54 = vmul.f32 %v676_v36, %v1570_v63  ;;  %v679_v55 = vmul.f32 %v676_v36, %v1572_v5  ;;  %v680_v56 = vmul.f32 %v676_v36, %v1574_v6 }
  0xa9   : >> { %v755_v47 = vadd.f32 %v754_v42, %v677_v39  ;;  %v761_v48 = vmul.f32 %v754_v42, %v726_v43  ;;  %v762_v50 = vmul.f32 %v754_v42, %v727_v46  ;;  %v763_v57 = vmul.f32 %v754_v42, %v728_v49 }
  0xaa   : >> { %v756_v58 = vmul.f32 %v754_v42, %v1584_v25  ;;  %v757_v29 = vmul.f32 %v754_v42, %v1586_v26  ;;  %v758_v35 = vmul.f32 %v754_v42, %v1588_v27  ;;  %v681_v40 = vmul.f32 %v676_v36, %v1577_v14 }
  0xab   : >> { %1285 = vrcp.f32 %v755_v47  ;;  %v769_v52 = vadd.f32 %v761_v48, %v683_v44  ;;  %v770_v53 = vadd.f32 %v762_v50, %v684_v45  ;;  %v759_v43 = vmul.f32 %v754_v42, %v1593_v33 }
  0xac   : >> { %v682_v63 = vmul.f32 %v676_v36, %v1581_v21  ;;  %v760_v5 = vmul.f32 %v754_v42, %v1598_v38  ;;  %v771_v6 = vadd.f32 %v763_v57, %v685_v51  ;;  %v764_v46 = vadd.f32 %v756_v58, %v678_v54 }
  0xad   : >> { %v765_v25 = vadd.f32 %v757_v29, %v679_v55  ;;  %v766_v49 = vadd.f32 %v758_v35, %v680_v56  ;;  %v767_v26 = vadd.f32 %v759_v43, %v681_v40  ;;  %v782_v27 = vstv %s1491_s10 }
  0xae   : >> { %v768_v59 = vadd.f32 %v760_v5, %v682_v63  ;;  %v789_v21 = vstv %s1495_s11  ;;  %v801_v36 = vstv %s1528_s15  ;;  %v804_v41 = vstv %s1530_s17 }
  0xb5   : >> { %v1286_v60 = vpop.eup %1285 }
  0xb6   : >> { %v774_v14 = vmul.f32 %v1286_v60, %v764_v46  ;;  %v775_v33 = vmul.f32 %v1286_v60, %v765_v25  ;;  %v776_v0 = vmul.f32 %v1286_v60, %v766_v49  ;;  %v777_v38 = vmul.f32 %v1286_v60, %v767_v26 }
  0xb7   : >> { %v778_v2 = vmul.f32 %v1286_v60, %v768_v59  ;;  %v779_v11 = vmul.f32 %v1286_v60, %v769_v52  ;;  %v780_v12 = vmul.f32 %v1286_v60, %v770_v53  ;;  %v781_v18 = vmul.f32 %v1286_v60, %v771_v6  ;;  %v885_v6 = vld [vmem:[%s884_s9] sm:$0xff] }
  0xb8   : >> { %v783_v3 = vmul.f32 %v782_v27, %v774_v14  ;;  %v1208_v4 = vpack.c.bf16 %v774_v14, %v774_v14  ;;  %v787_v7 = vmul.f32 %v786_v61, %v775_v33  ;;  %v1209_v8 = vpack.c.bf16 %v775_v33, %v775_v33 }
  0xb9   : >> { %v1210_v9 = vpack.c.bf16 %v776_v0, %v776_v0  ;;  %v1211_v10 = vpack.c.bf16 %v777_v38, %v777_v38  ;;  %v790_v15 = vmul.f32 %v789_v21, %v776_v0  ;;  %v1212_v17 = vpack.c.bf16 %v778_v2, %v778_v2 }
  0xba   : >> { %v785_v13 = vadd.f32 %v784_v62, %v783_v3  ;;  %841 = vst [vmem:[%s1621_s3] sm:$0xf] %v1208_v4  ;;  %842 = vst [vmem:[%s1621_s3 + $0x8] sm:$0xf] %v1209_v8  ;;  %v1213_v22 = vpack.c.bf16 %v779_v11, %v779_v11  ;;  %v1214_v23 = vpack.c.bf16 %v780_v12, %v780_v12 }
  0xbb   : >> { %843 = vst [vmem:[%s1621_s3 + $0x10] sm:$0xf] %v1210_v9  ;;  %844 = vst [vmem:[%s1621_s3 + $0x18] sm:$0xf] %v1211_v10  ;;  %v793_v28 = vmul.f32 %v792_v1, %v777_v38  ;;  %v1215_v30 = vpack.c.bf16 %v781_v18, %v781_v18  ;;  %v796_v34 = vmul.f32 %v795_v20, %v778_v2 }
  0xbc   : >> { %v788_v24 = vadd.f32 %v787_v7, %v785_v13  ;;  %845 = vst [vmem:[%s1621_s3 + $0x20] sm:$0xf] %v1212_v17  ;;  %846 = vst [vmem:[%s1621_s3 + $0x28] sm:$0xf] %v1213_v22  ;;  %v799_v39 = vmul.f32 %v798_v31, %v779_v11  ;;  %v802_v44 = vmul.f32 %v801_v36, %v780_v12 }
  0xbd   : >> { %847 = vst [vmem:[%s1621_s3 + $0x30] sm:$0xf] %v1214_v23  ;;  %848 = vst [vmem:[%s1621_s3 + $0x38] sm:$0xf] %v1215_v30  ;;  %v805_v47 = vmul.f32 %v804_v41, %v781_v18  ;;  %s1694_s3 = scalar_lea.vmem %s1677_s5, %s1502_s13 }
  0xbe   : >> { %v791_v32 = vadd.f32 %v790_v15, %v788_v24  ;;  %s867_s0 = scalar_lea.vmem %s1694_s3, %s1546_s23 }
  0xc0   : >> { %v794_v37 = vadd.f32 %v793_v28, %v791_v32 }
  0xc2   : >> { %v797_v42 = vadd.f32 %v796_v34, %v794_v37 }
  0xc4   : >> { %v800_v45 = vadd.f32 %v799_v39, %v797_v42 }
  0xc6   : >> { %v803_v48 = vadd.f32 %v802_v44, %v800_v45 }
  0xc8   : >> { %v806_v50 = vadd.f32 %v805_v47, %v803_v48 }
  0xca   : >> { %v849_v51 = vrot.slane %v806_v50, 4 }
  0xcc   : >> { %v850_v52 = vmax.f32 %v806_v50, %v849_v51 }
  0xce   : >> { %v851_v53 = vrot.slane %v850_v52, 2 }
  0xd0   : >> { %v852_v54 = vmax.f32 %v850_v52, %v851_v53 }
  0xd2   : >> { %v853_v55 = vrot.slane %v852_v54, 1 }
  0xd4   : >> { %v854_v56 = vmax.f32 %v852_v54, %v853_v55 }
  0xd6   : >> { %v855_v57 = vsub.f32 %v806_v50, %v854_v56  ;;  %vm871_vm0 = vcmp.eq.f32.partialorder %v806_v50, %v854_v56 }
  0xd7   : >> { %v872_v58 = vsel %vm871_vm0, %v1541_v19, 8 }
  0xd8   : >> { %v856_v29 = vmul.f32 1.442695, %v855_v57  ;;  %v873_v35 = vrot.slane %v872_v58, 4 }
  0xda   : >> { %1287 = vpow2.f32 %v856_v29  ;;  %vm874_vm1 = vcmp.lt.s32.totalorder %v872_v58, %v873_v35 }
  0xdb   : >> { %v875_v40 = vsel %vm874_vm1, %v872_v58, %v873_v35 }
  0xdc   : >> { %v876_v43 = vrot.slane %v875_v40, 2 }
  0xde   : >> { %vm877_vm2 = vcmp.lt.s32.totalorder %v875_v40, %v876_v43 }
  0xdf   : >> { %v878_v63 = vsel %vm877_vm2, %v875_v40, %v876_v43 }
  0xe0   : >> { %v879_v5 = vrot.slane %v878_v63, 1 }
  0xe2   : >> { %vm880_vm3 = vcmp.lt.s32.totalorder %v878_v63, %v879_v5 }
  0xe3   : >> { %v881_v46 = vsel %vm880_vm3, %v878_v63, %v879_v5 }
  0xe4   : >> { %v1288_v25 = vpop.eup %1287  ;;  %vm882_vm4 = vcmp.eq.s32.totalorder %v1541_v19, %v881_v46 }
  0xe5   : >> { %v858_v49 = vrot.slane %v1288_v25, 4  ;;  %v886_v26 = vsel %vm882_vm4, %v885_v6, 0.0 }
  0xe6   : >> { %v887_v59 = vrot.slane %v886_v26, 4 }
  0xe7   : >> { %v859_v60 = vadd.f32 %v1288_v25, %v858_v49 }
  0xe8   : >> { %v888_v27 = vadd.f32 %v887_v59, %v886_v26 }
  0xe9   : >> { %v860_v61 = vrot.slane %v859_v60, 2 }
  0xea   : >> { %v889_v14 = vrot.slane %v888_v27, 2 }
  0xeb   : >> { %v861_v62 = vadd.f32 %v860_v61, %v859_v60 }
  0xec   : >> { %v890_v33 = vadd.f32 %v889_v14, %v888_v27 }
  0xed   : >> { %v862_v0 = vrot.slane %v861_v62, 1 }
  0xee   : >> { %v891_v21 = vrot.slane %v890_v33, 1 }
  0xef   : >> { %v863_v38 = vadd.f32 %v862_v0, %v861_v62 }
  0xf0   : >> { %v892_v1 = vadd.f32 %v891_v21, %v890_v33 }
  0xf1   : >> { %1289 = vrcp.f32 %v863_v38 }
  0xf2   : >> { %898 = vst.msk [vmem:[%s893_s30] sm:$0x1] %vm896_vm5, %v892_v1 }
  0xf8   : > { %519 = sbr.rel (!%p517_p7) target bundleno = 78 (0x4e), region = 158 }
  0xfb   : >> { %v1290_v19 = vpop.eup %1289 }
  0xfc   : >> { %v865_v2 = vmul.f32 %v1290_v19, %v1288_v25 }
  0xfe   : >> { %868 = vst [vmem:[%s867_s0] sm:$0xff] %v865_v2 }
  0xff PF: > { %s18_s25 = sadd.s32 1, %s1352_s25   ;;  %s1695_s21 = sld [smem:[#allocation6_spill]] }
 0x100   : > { %p15_p8 = scmp.ge.s32.totalorder %s18_s25, 4   ;;  %s1696_s22 = sld [smem:[#allocation9_spill]] }
 0x101   : > { %s1697_s23 = sld [smem:[#allocation7_spill]]  ;;  %s1698_s24 = sld [smem:[#allocation8_spill]] }
 0x102   :  { %17 = sbr.rel (!%p15_p8) target bundleno = 6 (0x6), region = 169 }
 0x109   :  { %977 = vsyncpa [#allocation4], 1 }
 0x10a   :  { %979 = vsyncpa [#allocation4 + $0x1], 1 }

</bundles_post_ra>
